<compile_context>
chip_gen: v6e
topology: v6e:2x2x1
jax: 0.10.0
libtpu: 0.0.40
codegen_flags: <defaults>
</compile_context>

<pallas_src>
import functools

import jax
import jax.numpy as jnp
from jax.experimental import pallas as pl
from jax.experimental.pallas import tpu as pltpu


def _self_attn_kernel(gamma_ref, x_ref, wq_ref, bq_ref, wkv_ref, bkv_ref,
                      *rest, tq, with_attn):
    if with_attn:
        out_ref, attn_ref, k_ref, v_ref = rest
    else:
        out_ref, k_ref, v_ref = rest
        attn_ref = None
    C = wq_ref.shape[0]
    qi = pl.program_id(1)

    # --- K/V projection: once per batch element, cached as bf16 in VMEM ----
    @pl.when(qi == 0)
    def _():
        x_full = x_ref[0]                                                # (C, N) bf16
        kv = jnp.dot(wkv_ref[...], x_full,
                     preferred_element_type=jnp.float32) + bkv_ref[...]  # (2C, N) f32
        k_ref[...] = kv[:C, :].astype(jnp.bfloat16)
        v_ref[...] = kv[C:, :].astype(jnp.bfloat16)

    # --- Query tile: sliced from the resident full block (no extra DMA) ----
    start = pl.multiple_of(qi * tq, tq)
    x_q = x_ref[0, :, pl.ds(start, tq)]                                  # (C, tq) bf16
    # Wq / bq were pre-scaled by 1/sqrt(d_k) in the wrapper.
    q = jnp.dot(wq_ref[...], x_q,
                preferred_element_type=jnp.float32) + bq_ref[...]        # (C, tq) f32

    # energy[n, m] = sum_c q[c, n] * k[c, m]  -> (tq, N); bf16 MXU in, f32 acc.
    energy = jax.lax.dot_general(
        q.astype(jnp.bfloat16), k_ref[...],
        (((0,), (0,)), ((), ())), preferred_element_type=jnp.float32)

    # Softmax over the full (resident) key axis.
    m = jnp.max(energy, axis=-1, keepdims=True)
    p = jnp.exp(energy - m)
    attn = p * pl.reciprocal(jnp.sum(p, axis=-1, keepdims=True), approx=True)
    attn_bf = attn.astype(jnp.bfloat16)

    # out[c, n] = sum_m v[c, m] * attn[n, m]  -> (C, tq); bf16 MXU in, f32 acc.
    o = jax.lax.dot_general(
        v_ref[...], attn_bf,
        (((1,), (1,)), ((), ())), preferred_element_type=jnp.float32)

    out_ref[0] = gamma_ref[0] * o + x_q.astype(jnp.float32)
    if with_attn:
        attn_ref[0] = attn_bf


def _single_buffered_spec(block_shape, index_map):
    """Single-buffer spec for blocks whose index is (nearly) constant.

    Saves one full block of VMEM per input (matters on v7x's 64 MiB VMEM).
    Falls back to the default double-buffered spec on JAX versions without
    pipeline_mode / pl.Buffered.
    """
    try:
        return pl.BlockSpec(block_shape, index_map, pipeline_mode=pl.Buffered(1))
    except (TypeError, AttributeError):
        return pl.BlockSpec(block_shape, index_map)


def self_attn_pallas(x_nchw, wq, bq, wk, bk, wv, bv, gamma, *, tq=None,
                     return_attention=True):
    """x_nchw: (B, C, W, H) float32. wq/wk/wv: (C, C) squeezed 1x1-conv weights."""
    B, C, W, H = x_nchw.shape
    N = W * H
    if tq is None:
        if N % 256 == 0:
            tq = 256          # full MXU rows on v6e / v7x; fine on v5e too
        elif N % 128 == 0:
            tq = 128
        else:
            tq = N            # ragged / tiny maps: single query tile
    assert N % tq == 0, (N, tq)

    # Lane-dense (B, C, N) layout; bf16 MXU inputs (f32 accumulation in-kernel).
    x_cn = x_nchw.reshape(B, C, N).astype(jnp.bfloat16)
    scale = 1.0 / (C ** 0.5)                  # d_k = proj_query.size(-1) = C
    wq_s = (wq * scale).astype(jnp.bfloat16)
    bq_s = (bq * scale).reshape(C, 1).astype(jnp.float32)
    wkv = jnp.concatenate([wk, wv], axis=0).astype(jnp.bfloat16)            # (2C, C)
    bkv = jnp.concatenate([bk, bv], axis=0).reshape(2 * C, 1).astype(jnp.float32)
    gamma1 = gamma.reshape(1).astype(jnp.float32)

    in_specs = [
        pl.BlockSpec(memory_space=pltpu.MemorySpace.SMEM),                   # gamma
        _single_buffered_spec((1, C, N), lambda b, qi: (b, 0, 0)),           # x (K/V/Q/resid)
        _single_buffered_spec((C, C), lambda b, qi: (0, 0)),                 # Wq (pre-scaled)
        _single_buffered_spec((C, 1), lambda b, qi: (0, 0)),                 # bq (pre-scaled)
        _single_buffered_spec((2 * C, C), lambda b, qi: (0, 0)),             # Wkv fused
        _single_buffered_spec((2 * C, 1), lambda b, qi: (0, 0)),             # bkv fused
    ]
    out_specs = [pl.BlockSpec((1, C, tq), lambda b, qi: (b, 0, qi))]
    out_shape = [jax.ShapeDtypeStruct((B, C, N), jnp.float32)]
    if return_attention:
        out_specs.append(pl.BlockSpec((1, tq, N), lambda b, qi: (b, qi, 0)))
        # bf16 halves the dominant N^2 HBM writeback stream; it is the same
        # tensor used for the AV matmul, so returned map == map used for out.
        out_shape.append(jax.ShapeDtypeStruct((B, N, N), jnp.bfloat16))

    kernel = functools.partial(_self_attn_kernel, tq=tq,
                               with_attn=return_attention)

    results = pl.pallas_call(
        kernel,
        out_shape=tuple(out_shape),
        grid_spec=pltpu.PrefetchScalarGridSpec(
            num_scalar_prefetch=0,
            grid=(B, N // tq),
            in_specs=in_specs,
            out_specs=tuple(out_specs),
            scratch_shapes=[
                pltpu.VMEM((C, N), jnp.bfloat16),   # cached K (per batch element)
                pltpu.VMEM((C, N), jnp.bfloat16),   # cached V (per batch element)
            ],
        ),
        compiler_params=pltpu.CompilerParams(
            # B parallel (megacore shards the batch); qi must stay sequential
            # ("arbitrary") so the qi == 0 K/V-cache fill guard is valid.
            # TODO(synk): if B == 1 on v7x, split qi into an outer parallel
            # axis of size 2 so both TensorCores stay busy.
            dimension_semantics=("parallel", "arbitrary"),
            vmem_limit_bytes=64 * 1024 * 1024,
        ),
    )(gamma1, x_cn, wq_s, bq_s, wkv, bkv)

    if return_attention:
        out_cn, attn = results
    else:
        (out_cn,) = results
        attn = None
    out = out_cn.reshape(B, C, W, H)
    return out, attn


def self_attn_reference(x, wq, bq, wk, bk, wv, bv, gamma):
    """Pure-JAX f32 reference mirroring the PyTorch forward exactly."""
    B, C, W, H = x.shape
    N = W * H
    xf = x.reshape(B, C, N)
    q = jnp.einsum('oi,bin->bon', wq, xf) + bq[None, :, None]   # (B, C, N)
    k = jnp.einsum('oi,bin->bon', wk, xf) + bk[None, :, None]
    v = jnp.einsum('oi,bin->bon', wv, xf) + bv[None, :, None]
    proj_query = jnp.transpose(q, (0, 2, 1))                    # (B, N, C)
    energy = jnp.einsum('bnc,bcm->bnm', proj_query, k) / (C ** 0.5)
    attention = jax.nn.softmax(energy, axis=-1)                 # (B, N, N)
    out = jnp.einsum('bcm,bnm->bcn', v, attention)              # (B, C, N)
    out = out.reshape(B, C, W, H)
    out = gamma.reshape(()) * out + x
    return out, attention


if __name__ == "__main__":
    B, C, W, H = 2, 4, 16, 16
    key = jax.random.PRNGKey(0)
    kx, kq, kk, kv, kbq, kbk, kbv = jax.random.split(key, 7)

    x = jax.random.normal(kx, (B, C, W, H), dtype=jnp.float32)
    wq = jax.random.normal(kq, (C, C), dtype=jnp.float32) * 0.1
    wk = jax.random.normal(kk, (C, C), dtype=jnp.float32) * 0.1
    wv = jax.random.normal(kv, (C, C), dtype=jnp.float32) * 0.1
    bq = jax.random.normal(kbq, (C,), dtype=jnp.float32) * 0.1
    bk = jax.random.normal(kbk, (C,), dtype=jnp.float32) * 0.1
    bv = jax.random.normal(kbv, (C,), dtype=jnp.float32) * 0.1
    # PyTorch __init__ sets gamma = 0; use a nonzero deterministic value so
    # the attention path actually contributes to the output.
    gamma = jnp.array([0.5], dtype=jnp.float32)

    out_ref, attn_ref = self_attn_reference(x, wq, bq, wk, bk, wv, bv, gamma)

    # Default path (tq = 256 here since N = 256): out + bf16 attention map.
    out, attn = jax.block_until_ready(
        self_attn_pallas(x, wq, bq, wk, bk, wv, bv, gamma))
    assert out.shape == (B, C, W, H) and attn.shape == (B, W * H, W * H)
    assert attn.dtype == jnp.bfloat16
    # Tolerances cover bf16 MXU inputs, bf16 residual and approx reciprocal.
    assert jnp.allclose(out, out_ref, atol=2e-2, rtol=2e-2), \
        float(jnp.max(jnp.abs(out - out_ref)))
    attn_f32 = attn.astype(jnp.float32)
    assert jnp.allclose(attn_f32, attn_ref, atol=1e-2, rtol=5e-2), \
        float(jnp.max(jnp.abs(attn_f32 - attn_ref)))

    # Multi-query-tile path with the attention output skipped (exercises the
    # cached-K/V reuse across qi tiles and the attention-free pipeline).
    out2, attn2 = jax.block_until_ready(
        self_attn_pallas(x, wq, bq, wk, bk, wv, bv, gamma, tq=128,
                         return_attention=False))
    assert attn2 is None
    assert jnp.allclose(out2, out_ref, atol=2e-2, rtol=2e-2), \
        float(jnp.max(jnp.abs(out2 - out_ref)))

    print("KERNEL_OK")
</pallas_src>

<mosaic_0001>
module attributes {stable_mosaic.version = 11 : i64} {
  func.func @_self_attn_kernel(%arg0: i32, %arg1: i32, %arg2: memref<1xf32, #tpu.memory_space<smem>>, %arg3: memref<1x4x256xbf16, #tpu.memory_space<vmem>>, %arg4: memref<4x4xbf16, #tpu.memory_space<vmem>>, %arg5: memref<4x1xf32, #tpu.memory_space<vmem>>, %arg6: memref<8x4xbf16, #tpu.memory_space<vmem>>, %arg7: memref<8x1xf32, #tpu.memory_space<vmem>>, %arg8: memref<1x4x256xf32, #tpu.memory_space<vmem>>, %arg9: memref<1x256x256xbf16, #tpu.memory_space<vmem>>, %arg10: memref<4x256xbf16, #tpu.memory_space<vmem>>, %arg11: memref<4x256xbf16, #tpu.memory_space<vmem>>) attributes {dimension_semantics = [#tpu.dimension_semantics<parallel>, #tpu.dimension_semantics<arbitrary>], iteration_bounds = array<i64: 2, 1>, scalar_prefetch = 0 : i64, scratch_operands = 2 : i64, tpu.core_type = #tpu.core_type<tc>, window_params = [{transform_indices = @transform_0, window_bounds = array<i64: 1>}, {pipeline_mode = #tpu.pipeline_mode<synchronous>, transform_indices = @transform_1, window_bounds = array<i64: 1, 4, 256>}, {pipeline_mode = #tpu.pipeline_mode<synchronous>, transform_indices = @transform_2, window_bounds = array<i64: 4, 4>}, {pipeline_mode = #tpu.pipeline_mode<synchronous>, transform_indices = @transform_3, window_bounds = array<i64: 4, 1>}, {pipeline_mode = #tpu.pipeline_mode<synchronous>, transform_indices = @transform_4, window_bounds = array<i64: 8, 4>}, {pipeline_mode = #tpu.pipeline_mode<synchronous>, transform_indices = @transform_5, window_bounds = array<i64: 8, 1>}, {transform_indices = @transform_6, window_bounds = array<i64: 1, 4, 256>}, {transform_indices = @transform_7, window_bounds = array<i64: 1, 256, 256>}]} {
    %c0_i32 = arith.constant 0 : i32
    %0 = arith.cmpi eq, %arg1, %c0_i32 : i32
    %1 = arith.extui %0 : i1 to i32
    %c0_i32_0 = arith.constant 0 : i32
    %2 = arith.cmpi ne, %1, %c0_i32_0 : i32
    scf.if %2 {
      %c0_21 = arith.constant 0 : index
      %c0_22 = arith.constant 0 : index
      %c0_23 = arith.constant 0 : index
      %40 = vector.load %arg3[%c0_21, %c0_22, %c0_23] : memref<1x4x256xbf16, #tpu.memory_space<vmem>>, vector<1x4x256xbf16>
      %41 = vector.shape_cast %40 : vector<1x4x256xbf16> to vector<4x256xbf16>
      %c0_24 = arith.constant 0 : index
      %c0_25 = arith.constant 0 : index
      %42 = vector.load %arg6[%c0_24, %c0_25] : memref<8x4xbf16, #tpu.memory_space<vmem>>, vector<8x4xbf16>
      %cst_26 = arith.constant dense<0.000000e+00> : vector<8x256xf32>
      %43 = tpu.matmul %42, %41, %cst_26 {dimension_numbers = #tpu.dot_dimension_numbers<[1], [0], [0], [1], [0, 0, 1, 1], [], []>} : vector<8x4xbf16>, vector<4x256xbf16>, vector<8x256xf32> -> vector<8x256xf32>
      %c0_27 = arith.constant 0 : index
      %c0_28 = arith.constant 0 : index
      %44 = vector.load %arg7[%c0_27, %c0_28] : memref<8x1xf32, #tpu.memory_space<vmem>>, vector<8x1xf32>
      %45 = vector.broadcast %44 : vector<8x1xf32> to vector<8x256xf32>
      %46 = arith.addf %43, %45 : vector<8x256xf32>
      %47 = vector.extract_strided_slice %46 {offsets = [0, 0], sizes = [4, 256], strides = [1, 1]} : vector<8x256xf32> to vector<4x256xf32>
      %48 = arith.truncf %47 : vector<4x256xf32> to vector<4x256xbf16>
      %c0_29 = arith.constant 0 : index
      %c0_30 = arith.constant 0 : index
      %49 = vector.load %arg10[%c0_29, %c0_30] : memref<4x256xbf16, #tpu.memory_space<vmem>>, vector<4x256xbf16>
      tpu.vector_store %arg10[%c0_29, %c0_30], %48 {strides = array<i32>} : memref<4x256xbf16, #tpu.memory_space<vmem>>, vector<4x256xbf16>,
      %50 = vector.extract_strided_slice %46 {offsets = [4, 0], sizes = [4, 256], strides = [1, 1]} : vector<8x256xf32> to vector<4x256xf32>
      %51 = arith.truncf %50 : vector<4x256xf32> to vector<4x256xbf16>
      %c0_31 = arith.constant 0 : index
      %c0_32 = arith.constant 0 : index
      %52 = vector.load %arg11[%c0_31, %c0_32] : memref<4x256xbf16, #tpu.memory_space<vmem>>, vector<4x256xbf16>
      tpu.vector_store %arg11[%c0_31, %c0_32], %51 {strides = array<i32>} : memref<4x256xbf16, #tpu.memory_space<vmem>>, vector<4x256xbf16>,
    } else {
    }
    %c256_i32 = arith.constant 256 : i32
    %3 = arith.muli %arg1, %c256_i32 : i32
    %4 = tpu.assume_multiple %3, 256 : i32
    %c0 = arith.constant 0 : index
    %c0_1 = arith.constant 0 : index
    %5 = arith.index_cast %4 : i32 to index
    %6 = vector.load %arg3[%c0, %c0_1, %5] : memref<1x4x256xbf16, #tpu.memory_space<vmem>>, vector<1x4x256xbf16>
    %7 = vector.shape_cast %6 : vector<1x4x256xbf16> to vector<4x256xbf16>
    %c0_2 = arith.constant 0 : index
    %c0_3 = arith.constant 0 : index
    %8 = vector.load %arg4[%c0_2, %c0_3] : memref<4x4xbf16, #tpu.memory_space<vmem>>, vector<4x4xbf16>
    %cst = arith.constant dense<0.000000e+00> : vector<4x256xf32>
    %9 = tpu.matmul %8, %7, %cst {dimension_numbers = #tpu.dot_dimension_numbers<[1], [0], [0], [1], [0, 0, 1, 1], [], []>} : vector<4x4xbf16>, vector<4x256xbf16>, vector<4x256xf32> -> vector<4x256xf32>
    %c0_4 = arith.constant 0 : index
    %c0_5 = arith.constant 0 : index
    %10 = vector.load %arg5[%c0_4, %c0_5] : memref<4x1xf32, #tpu.memory_space<vmem>>, vector<4x1xf32>
    %11 = vector.broadcast %10 : vector<4x1xf32> to vector<4x256xf32>
    %12 = arith.addf %9, %11 : vector<4x256xf32>
    %13 = arith.truncf %12 : vector<4x256xf32> to vector<4x256xbf16>
    %c0_6 = arith.constant 0 : index
    %c0_7 = arith.constant 0 : index
    %14 = vector.load %arg10[%c0_6, %c0_7] : memref<4x256xbf16, #tpu.memory_space<vmem>>, vector<4x256xbf16>
    %cst_8 = arith.constant dense<0.000000e+00> : vector<256x256xf32>
    %15 = tpu.matmul %13, %14, %cst_8 {dimension_numbers = #tpu.dot_dimension_numbers<[0], [0], [1], [1], [0, 1, 1, 1], [], []>} : vector<4x256xbf16>, vector<4x256xbf16>, vector<256x256xf32> -> vector<256x256xf32>
    %cst_9 = arith.constant dense<0xFF800000> : vector<256xf32>
    %16 = vector.multi_reduction <maximumf>, %15, %cst_9 [1] : vector<256x256xf32> to vector<256xf32>
    %17 = vector.shape_cast %16 : vector<256xf32> to vector<256x1xf32>
    %18 = vector.broadcast %17 : vector<256x1xf32> to vector<256x256xf32>
    %19 = arith.subf %15, %18 : vector<256x256xf32>
    %20 = math.exp %19 : vector<256x256xf32>
    %cst_10 = arith.constant dense<0.000000e+00> : vector<256xf32>
    %21 = vector.multi_reduction <add>, %20, %cst_10 [1] : vector<256x256xf32> to vector<256xf32>
    %22 = vector.shape_cast %21 : vector<256xf32> to vector<256x1xf32>
    %23 = tpu.reciprocal %22 {approx = true} : vector<256x1xf32> -> vector<256x1xf32>
    %24 = vector.broadcast %23 : vector<256x1xf32> to vector<256x256xf32>
    %25 = arith.mulf %20, %24 : vector<256x256xf32>
    %26 = arith.truncf %25 : vector<256x256xf32> to vector<256x256xbf16>
    %c0_11 = arith.constant 0 : index
    %c0_12 = arith.constant 0 : index
    %27 = vector.load %arg11[%c0_11, %c0_12] : memref<4x256xbf16, #tpu.memory_space<vmem>>, vector<4x256xbf16>
    %cst_13 = arith.constant dense<0.000000e+00> : vector<4x256xf32>
    %28 = tpu.matmul %27, %26, %cst_13 {dimension_numbers = #tpu.dot_dimension_numbers<[1], [1], [0], [0], [0, 0, 1, 0], [], []>} : vector<4x256xbf16>, vector<256x256xbf16>, vector<4x256xf32> -> vector<4x256xf32>
    %c0_14 = arith.constant 0 : index
    %29 = memref.load %arg2[%c0_14] : memref<1xf32, #tpu.memory_space<smem>>
    %30 = vector.broadcast %29 : f32 to vector<4x256xf32>
    %31 = arith.mulf %30, %28 : vector<4x256xf32>
    %32 = arith.extf %7 : vector<4x256xbf16> to vector<4x256xf32>
    %33 = arith.addf %31, %32 : vector<4x256xf32>
    %c0_15 = arith.constant 0 : index
    %c0_16 = arith.constant 0 : index
    %c0_17 = arith.constant 0 : index
    %34 = vector.load %arg8[%c0_15, %c0_16, %c0_17] : memref<1x4x256xf32, #tpu.memory_space<vmem>>, vector<1x4x256xf32>
    %35 = vector.shape_cast %34 : vector<1x4x256xf32> to vector<4x256xf32>
    %36 = vector.shape_cast %33 : vector<4x256xf32> to vector<1x4x256xf32>
    tpu.vector_store %arg8[%c0_15, %c0_16, %c0_17], %36 {strides = array<i32>} : memref<1x4x256xf32, #tpu.memory_space<vmem>>, vector<1x4x256xf32>,
    %c0_18 = arith.constant 0 : index
    %c0_19 = arith.constant 0 : index
    %c0_20 = arith.constant 0 : index
    %37 = vector.load %arg9[%c0_18, %c0_19, %c0_20] : memref<1x256x256xbf16, #tpu.memory_space<vmem>>, vector<1x256x256xbf16>
    %38 = vector.shape_cast %37 : vector<1x256x256xbf16> to vector<256x256xbf16>
    %39 = vector.shape_cast %26 : vector<256x256xbf16> to vector<1x256x256xbf16>
    tpu.vector_store %arg9[%c0_18, %c0_19, %c0_20], %39 {strides = array<i32>} : memref<1x256x256xbf16, #tpu.memory_space<vmem>>, vector<1x256x256xbf16>,
    return
  }
  func.func @transform_0(%arg0: i32, %arg1: i32) -> i32 {
    %c0_i32 = arith.constant 0 : i32
    %c0_i32_0 = arith.constant 0 : i32
    return %c0_i32 : i32
  }
  func.func @transform_1(%arg0: i32, %arg1: i32) -> (i32, i32, i32) {
    %c0_i32 = arith.constant 0 : i32
    %c0_i32_0 = arith.constant 0 : i32
    %c0_i32_1 = arith.constant 0 : i32
    return %arg0, %c0_i32, %c0_i32_0 : i32, i32, i32
  }
  func.func @transform_2(%arg0: i32, %arg1: i32) -> (i32, i32) {
    %c0_i32 = arith.constant 0 : i32
    %c0_i32_0 = arith.constant 0 : i32
    %c0_i32_1 = arith.constant 0 : i32
    return %c0_i32, %c0_i32_0 : i32, i32
  }
  func.func @transform_3(%arg0: i32, %arg1: i32) -> (i32, i32) {
    %c0_i32 = arith.constant 0 : i32
    %c0_i32_0 = arith.constant 0 : i32
    %c0_i32_1 = arith.constant 0 : i32
    return %c0_i32, %c0_i32_0 : i32, i32
  }
  func.func @transform_4(%arg0: i32, %arg1: i32) -> (i32, i32) {
    %c0_i32 = arith.constant 0 : i32
    %c0_i32_0 = arith.constant 0 : i32
    %c0_i32_1 = arith.constant 0 : i32
    return %c0_i32, %c0_i32_0 : i32, i32
  }
  func.func @transform_5(%arg0: i32, %arg1: i32) -> (i32, i32) {
    %c0_i32 = arith.constant 0 : i32
    %c0_i32_0 = arith.constant 0 : i32
    %c0_i32_1 = arith.constant 0 : i32
    return %c0_i32, %c0_i32_0 : i32, i32
  }
  func.func @transform_6(%arg0: i32, %arg1: i32) -> (i32, i32, i32) {
    %c0_i32 = arith.constant 0 : i32
    %c0_i32_0 = arith.constant 0 : i32
    return %arg0, %c0_i32, %arg1 : i32, i32, i32
  }
  func.func @transform_7(%arg0: i32, %arg1: i32) -> (i32, i32, i32) {
    %c0_i32 = arith.constant 0 : i32
    %c0_i32_0 = arith.constant 0 : i32
    return %arg0, %arg1, %c0_i32 : i32, i32, i32
  }
}

</mosaic_0001>

<bundles_post_ra>
// kernel: tpu_custom_call.1
= control target key start
LH: loop header
LB: loop body
LE: loop exit
PB: predicated region body
PF: predicated region fallthrough
CT: control target
= control target key end

     0   :  { %s2954_s0 = inlined_call_operand.<no memory space> [shape: f32[1], index: 0, kind: input, shape index: {}]   ;;  %s2955_s1 = inlined_call_operand.vmem [shape: bf16[2,4,256], index: 1, kind: input, shape index: {}]   ;;  %s2956_s2 = inlined_call_operand.vmem [shape: bf16[4,4], index: 2, kind: input, shape index: {}]   ;;  %s2957_s3 = inlined_call_operand.vmem [shape: f32[4,1], index: 3, kind: input, shape index: {}]   ;;  %s2958_s4 = inlined_call_operand.vmem [shape: bf16[8,4], index: 4, kind: input, shape index: {}]   ;;  %s2959_s5 = inlined_call_operand.vmem [shape: f32[8,1], index: 5, kind: input, shape index: {}]   ;;  %s2960_s6 = inlined_call_operand.hbm [shape: f32[2,4,256], index: 6, kind: output, shape index: {0}]   ;;  %s2961_s7 = inlined_call_operand.hbm [shape: bf16[2,256,256], index: 7, kind: output, shape index: {1}]  }
   0x1   :  { %13 = sst [smem:[#allocation4]] %s2954_s0 }
   0x2   :  { %14 = vsyncpa [#allocation6], 0 }
   0x3   :  { %16 = vsyncpa [#allocation6 + $0x1], 0 }
   0x4   :  { %17 = vsyncpa [#allocation8], 0 }
   0x5   :  { %19 = vsyncpa [#allocation8 + $0x1], 0  ;;  %s2212_s26 = smov 0   ;;  %s2214_s27 = smov 0  }
   0x6   :  { %s2216_s28 = smov 0   ;;  %s2218_s29 = smov 0  }
   0x7   :  { %s2220_s30 = smov 0   ;;  %s2222_s8 = smov 0  }
   0x8 LB: > { %s1686_s0 = sadd.s32 4294967295, %s2161_s8   ;;  %s1687_s9 = sadd.s32 4294967294, %s2161_s8   ;;  %s2161_s8 = sphi %s2222_s8, %s25_s8   ;;  %s2157_s30 = sphi %s2220_s30, %s3049_s30   ;;  %s2153_s29 = sphi %s2218_s29, %s3048_s29   ;;  %s2149_s28 = sphi %s2216_s28, %s3047_s28   ;;  %s2145_s27 = sphi %s2214_s27, %s3046_s27   ;;  %s2141_s26 = sphi %s2212_s26, %s3045_s26  }
   0x9   : > { %s37_s10 = sadd.s32 1, %s2157_s30  ;;  %s177_s11 = sadd.s32 1, %s2149_s28 }
   0xa   : > { %p39_p0 = scmp.ge.s32.totalorder %s37_s10, 2  ;;  %p187_p1 = scmp.ne.s32.totalorder %s2149_s28, %s2145_s27 }
   0xb   : > { %p188_p2 = scmp.eq.s32.totalorder %s1686_s0, 1  ;;  %p193_p3 = scmp.ne.s32.totalorder %s2145_s27, %s2141_s26 }
   0xc   : > { %s3051_s10 = smov (%p39_p0, %s37_s10), 0  ;;  %p194_p5 = scmp.eq.s32.totalorder %s1687_s9, 1 }
   0xd   : > { %p2252_p4 = por %p188_p2, %p187_p1  ;;  %s172_s13 = ssub.s32 %s2157_s30, %s3051_s10 }
   0xe   : > { %p1689_p6 = scmp.ge.s32.totalorder %s2161_s8, 1  ;;  %p175_p7 = scmp.eq.s32.totalorder %s172_s13, 0 }
   0xf   : > { %p2259_p8 = por %p194_p5, %p193_p3  ;;  %p263_p9 = scmp.lt.s32.totalorder %s2161_s8, 3 }
  0x10   : > { %s2265_s15 = scalar_select %p175_p7, %s2149_s28, %s177_s11  }
  0x11   : > { %p264_p10 = pnand %p1689_p6, %p263_p9 }
  0x13   : > { %267 = sbr.rel (%p264_p10) target bundleno = 1318 (0x526), region = 44 }
  0x18   : > { %p300_p11 = scmp.lt.s32.totalorder %s2153_s29, 1  ;;  %v389_v0 = vlaneseq  ;;  %v2163_v1 = vmov 1983009808   ;;  %v2164_v3 = vmov 0   ;;  %v405_v5 = vld [vmem:[%s2957_s3] sm:$0xf] }
  0x19   : > { %v387_v2 = vunpack.c.l.s4 %v2163_v1  ;;  %372 = vmatprep.mubr.bf16.mxu0 %v2164_v3  ;;  %463 = vmatprep.mubr.bf16.mxu1 %v2164_v3  ;;  %vm333_vm0 = vcmask 1041408   ;;  %v314_v7 = vld [vmem:[%s2959_s5] sm:$0xff]  ;;  %vm329_vm1 = vcmask 31744   ;;  %s2720_s13 = sand.u32 1, %s2145_s27   ;;  %s1794_s18 = sshll.u32 %s2153_s29, 12 }
  0x1a   : > { %s301_s16 = scalar_select %p300_p11, %s2153_s29, 1  ;;  %v390_v4 = vshrl.u32 %v389_v0, 7  ;;  %1859 = vset.pattern.permute.xlu0 %v2164_v3  ;;  %v313_v15 = vld [vmem:[%s2958_s4] sm:$0xf] }
  0x1b   : > { %v388_v6 = vunpack.c.0.s8 %v387_v2  ;;  %408 = vperm.xlu0 %1859, %v405_v5   ;;  %v404_v16 = vld [vmem:[%s2956_s2] sm:$0x3]  ;;  %s2886_s22 = scalar_lea.hbm %s2961_s7, %s1794_s18  ;;  %s1541_s23 = scalar_lea.sflag [#allocation8], %s2720_s13 }
  0x1c   : > { %s1760_s19 = sshll.u32 %s301_s16, 2  ;;  %s1691_s16 = sshll.u32 %s2720_s13, 8 }
  0x1d   : > { %s2281_s24 = scalar_lea.vmem %s2955_s1, %s1760_s19  ;;  %v391_v8 = vsub.s32 %v388_v6, %v390_v4  ;;  %s2729_s17 = scalar_lea.vmem [#allocation7], %s1691_s16 }
  0x1e   : > { %v1694_v9 = vld.sshfl [vmem:[%s2281_s24] sm:$0x33 pattern:$0x76325410]  ;;  %s1573_s19 = sshll.u32 %s2729_s17, 4  ;;  %s2165_s0 = smov [#allocation7]   ;;  %s2888_s19 = int_to_ptr.vmem [resolvable:$true] %s1573_s19 }
  0x1f   : > { %v2054_v10 = vld.sshfl [vmem:[%s2281_s24] sm:$0x33 pattern:$0x76325410]  ;;  %v328_v11 = vcombine.high %v1694_v9, %v1694_v9  ;;  %v335_v12 = vsel %vm333_vm0, %v1694_v9, 0  ;;  %317 = vperm.xlu0 %1859, %v314_v7   ;;  %s2055_s25 = scalar_lea.vmem %s2888_s19, 4096 }
  0x20   : > { %v419_v13 = vcombine.high %v2054_v10, %v2054_v10  ;;  %v426_v14 = vsel %vm333_vm0, %v2054_v10, 0  ;;  %p2056_p12 = scmp.ne.s32.totalorder %s2888_s19, %s2055_s25  ;;  %s2059_s9 = sshll.u32 %s2165_s0, 4  ;;  %s2060_s9 = int_to_ptr.vmem [resolvable:$false] %s2059_s9 }
  0x21   : > { %1695 = vmatprep.subr.msk.bf16.mxu0 %vm333_vm0, %v328_v11  ;;  %s2061_s11 = scalar_lea.vmem %s2060_s9, 8192  ;;  %p2062_p1 = scmp.lt.s32.totalorder %s2888_s19, %s2060_s9 }
  0x22   : > { %355 = vmatpush1.bf16.msra.mxu0 %v335_v12  ;;  %1699 = vmatprep.subr.msk.bf16.mxu1 %vm333_vm0, %v419_v13  ;;  %p2057_p13 = pnand %p2056_p12, %p2252_p4  ;;  %p2063_p2 = scmp.lt.s32.totalorder %s2061_s11, %s2055_s25 }
  0x23   : > { %446 = vmatpush1.bf16.msra.mxu1 %v426_v14 }
  0x24   : > { %p2058_p0 = pneg %p2057_p13  ;;  %p2064_p3 = por %p2063_p2, %p2062_p1 }
  0x25   : > { %1696 = vmatmul.mubr.msk.bf16.vlgmr.msra.gmra.mxu0 %vm329_vm1, %v313_v15 }
  0x26   : > { %602 = vmatprep.mubr.bf16.mxu0 %v2164_v3  ;;  %1700 = vmatmul.mubr.msk.bf16.vlgmr.msra.gmra.mxu1 %vm329_vm1, %v404_v16  ;;  %p2065_p5 = pnand %p2064_p3, %p2058_p0 }
  0x96   : > { %v409_v17 = vpop.permute.xlu0 %408 }
  0x9a   : > { %v318_v18 = vpop.permute.xlu0 %317 }
  0xe5   : > { %v374_v19 = vpop.f32.mrf.mxu0 }
  0xe6   : > { %v375_v20 = vadd.f32 %v374_v19, %v318_v18  ;;  %v465_v22 = vpop.f32.mrf.mxu1 }
  0xe7   : > { %v376_v21 = vpop.f32.mrf.mxu0  ;;  %v466_v24 = vadd.f32 %v465_v22, %v409_v17 }
  0xe8   : > { %v377_v23 = vadd.f32 %v376_v21, %v318_v18  ;;  %v467_v25 = vpop.f32.mrf.mxu1 }
  0xe9   : > { %v378_v26 = vpop.f32.mrf.mxu0  ;;  %v472_v28 = vpack.c.bf16 %v466_v24, %v466_v24  ;;  %v468_v39 = vadd.f32 %v467_v25, %v409_v17 }
  0xea   : > { %v1697_v27 = vpack.c.bf16 %v377_v23, %v375_v20  ;;  %v469_v29 = vpop.f32.mrf.mxu1 }
  0xeb   : > { %v379_v30 = vpop.f32.mrf.mxu0  ;;  %475 = vxpose.xlu1.c.b16.start.end [1/1] (short) %v472_v28, 128  ;;  %v473_v40 = vpack.c.bf16 %v468_v39, %v468_v39 }
  0xec   : > { %v392_v31 = vrot.slane %v1697_v27, %v391_v8  ;;  %1698 = vst.sshfl [vmem:[#allocation2] sm:$0x33 pattern:$0x76325410] %v1697_v27  ;;  %v470_v32 = vpop.f32.mrf.mxu1 }
  0xee   : > { %v395_v33 = vcombine.high %v392_v31, %v392_v31 }
  0xf0   : > { %397 = vst [vmem:[#allocation3] sm:$0xf] %v395_v33 }
  0xf3   : > { %v1701_v34 = vld.sshfl [vmem:[#allocation2] sm:$0x33 pattern:$0x76325410] }
  0xf4   : > { %v515_v35 = vcombine.high %v1701_v34, %v1701_v34  ;;  %v565_v36 = vsel %vm333_vm0, %v1701_v34, 0 }
  0xf6   : > { %1702 = vmatprep.subr.msk.bf16.mxu0 %vm333_vm0, %v515_v35 }
  0xf7   : > { %585 = vmatpush1.bf16.msra.mxu0 %v565_v36  ;;  %v1719_v37 = vld.sshfl [vmem:[#allocation3] sm:$0x33 pattern:$0x76325410] }
  0xf8   : > { %v1284_v38 = vcombine.high %v1719_v37, %v1719_v37 }
  0xfa   : > { %1319 = vmatprep.mubr.bf16.mxu1 %v1284_v38 }
 0x108   : > { %491 = vxpose.xlu1.c.b16.start.end [1/1] (short) %v473_v40, 128 }
 0x14d   : > { %v483_v41 = vpop.trf.xlu1 }
 0x14e   : > { %1703 = vmatmul.mubr.msk.bf16.vlgmr.msra.gmra.mxu0 %vm329_vm1, %v483_v41 }
 0x14f   : > { %612 = vmatprep.mubr.bf16.mxu0 %v2164_v3 }
 0x151   : > { %v484_v42 = vpop.trf.xlu1 }
 0x155   : > { %v485_v43 = vpop.trf.xlu1 }
 0x156   : > { %1704 = vmatmul.mubr.msk.bf16.gmra.mxu0 %vm329_vm1, %v484_v42 }
 0x157   : > { %622 = vmatprep.mubr.bf16.mxu0 %v2164_v3 }
 0x159   : > { %v486_v44 = vpop.trf.xlu1 }
 0x15d   : > { %v487_v45 = vpop.trf.xlu1 }
 0x15e   : > { %1705 = vmatmul.mubr.msk.bf16.gmra.mxu0 %vm329_vm1, %v485_v43 }
 0x15f   : > { %632 = vmatprep.mubr.bf16.mxu0 %v2164_v3 }
 0x161   : > { %v488_v46 = vpop.trf.xlu1 }
 0x165   : > { %v489_v47 = vpop.trf.xlu1 }
 0x166   : > { %1706 = vmatmul.mubr.msk.bf16.gmra.mxu0 %vm329_vm1, %v486_v44 }
 0x167   : > { %642 = vmatprep.mubr.bf16.mxu0 %v2164_v3 }
 0x169   : > { %v490_v48 = vpop.trf.xlu1 }
 0x16d   : > { %v499_v49 = vpop.trf.xlu1 }
 0x16e   : > { %1707 = vmatmul.mubr.msk.bf16.gmra.mxu0 %vm329_vm1, %v487_v45 }
 0x16f   : > { %652 = vmatprep.mubr.bf16.mxu0 %v2164_v3 }
 0x171   : > { %v500_v50 = vpop.trf.xlu1 }
 0x175   : > { %v501_v51 = vpop.trf.xlu1 }
 0x176   : > { %1708 = vmatmul.mubr.msk.bf16.gmra.mxu0 %vm329_vm1, %v488_v46 }
 0x177   : > { %662 = vmatprep.mubr.bf16.mxu0 %v2164_v3 }
 0x179   : > { %v502_v52 = vpop.trf.xlu1 }
 0x17d   : > { %v503_v53 = vpop.trf.xlu1 }
 0x17e   : > { %1709 = vmatmul.mubr.msk.bf16.gmra.mxu0 %vm329_vm1, %v489_v47 }
 0x17f   : > { %672 = vmatprep.mubr.bf16.mxu0 %v2164_v3 }
 0x181   : > { %v504_v54 = vpop.trf.xlu1 }
 0x185   : > { %v505_v55 = vpop.trf.xlu1 }
 0x186   : > { %1710 = vmatmul.mubr.msk.bf16.gmra.mxu0 %vm329_vm1, %v490_v48 }
 0x187   : > { %682 = vmatprep.mubr.bf16.mxu0 %v2164_v3 }
 0x189   : > { %v506_v56 = vpop.trf.xlu1 }
 0x18e   : > { %1711 = vmatmul.mubr.msk.bf16.gmra.mxu0 %vm329_vm1, %v499_v49 }
 0x18f   : > { %692 = vmatprep.mubr.bf16.mxu0 %v2164_v3 }
 0x196   : > { %1712 = vmatmul.mubr.msk.bf16.gmra.mxu0 %vm329_vm1, %v500_v50 }
 0x197   : > { %702 = vmatprep.mubr.bf16.mxu0 %v2164_v3 }
 0x19e   : > { %1713 = vmatmul.mubr.msk.bf16.gmra.mxu0 %vm329_vm1, %v501_v51 }
 0x19f   : > { %712 = vmatprep.mubr.bf16.mxu0 %v2164_v3 }
 0x1a6   : > { %1714 = vmatmul.mubr.msk.bf16.gmra.mxu0 %vm329_vm1, %v502_v52 }
 0x1a7   : > { %722 = vmatprep.mubr.bf16.mxu0 %v2164_v3 }
 0x1ae   : > { %1715 = vmatmul.mubr.msk.bf16.gmra.mxu0 %vm329_vm1, %v503_v53 }
 0x1af   : > { %732 = vmatprep.mubr.bf16.mxu0 %v2164_v3 }
 0x1b6   : > { %1716 = vmatmul.mubr.msk.bf16.gmra.mxu0 %vm329_vm1, %v504_v54 }
 0x1b7   : > { %742 = vmatprep.mubr.bf16.mxu0 %v2164_v3 }
 0x1be   : > { %1717 = vmatmul.mubr.msk.bf16.gmra.mxu0 %vm329_vm1, %v505_v55 }
 0x1bf   : > { %752 = vmatprep.mubr.bf16.mxu0 %v2164_v3 }
 0x1c6   : > { %1718 = vmatmul.mubr.msk.bf16.gmra.mxu0 %vm329_vm1, %v506_v56 }
 0x20e   : > { %v2331_v57 = vpop.f32.mrf.mxu0 }
 0x210   : > { %v2333_v58 = vpop.f32.mrf.mxu0 }
 0x212   : > { %v2335_v59 = vpop.f32.mrf.mxu0 }
 0x214   : > { %v2337_v60 = vpop.f32.mrf.mxu0 }
 0x215   : > { %v766_v39 = vmax.f32 %v2335_v59, %v2337_v60 }
 0x216   : > { %v2339_v61 = vpop.f32.mrf.mxu0 }
 0x218   : > { %v2341_v62 = vpop.f32.mrf.mxu0 }
 0x21a   : > { %v2343_v63 = vpop.f32.mrf.mxu0 }
 0x21c   : > { %v2345_v0 = vpop.f32.mrf.mxu0 }
 0x21d   : > { %v772_v35 = vmax.f32 %v2343_v63, %v2345_v0 }
 0x21e   : > { %v2347_v1 = vpop.f32.mrf.mxu0 }
 0x220   : > { %v2349_v2 = vpop.f32.mrf.mxu0 }
 0x221   : > { %v775_v54 = vmax.f32 %v2347_v1, %v2349_v2 }
 0x222   : > { %v2351_v3 = vpop.f32.mrf.mxu0 }
 0x224   : > { %v2353_v4 = vpop.f32.mrf.mxu0 }
 0x225   : > { %v778_v31 = vmax.f32 %v2351_v3, %v2353_v4 }
 0x226   : > { %v2355_v5 = vpop.f32.mrf.mxu0 }
 0x228   : > { %v2357_v6 = vpop.f32.mrf.mxu0 }
 0x229   : > { %v781_v48 = vmax.f32 %v2355_v5, %v2357_v6 }
 0x22a   : > { %v2359_v7 = vpop.f32.mrf.mxu0 }
 0x22c   : > { %v2361_v8 = vpop.f32.mrf.mxu0 }
 0x22d   : > { %v784_v51 = vmax.f32 %v2359_v7, %v2361_v8 }
 0x22e   : > { %v2363_v9 = vpop.f32.mrf.mxu0 }
 0x230   : > { %v2365_v10 = vpop.f32.mrf.mxu0 }
 0x231   : > { %v787_v42 = vmax.f32 %v2363_v9, %v2365_v10 }
 0x232   : > { %v2367_v11 = vpop.f32.mrf.mxu0 }
 0x234   : > { %v2369_v12 = vpop.f32.mrf.mxu0 }
 0x235   : > { %v790_v45 = vmax.f32 %v2367_v11, %v2369_v12 }
 0x236   : > { %v2371_v13 = vpop.f32.mrf.mxu0 }
 0x238   : > { %v2373_v14 = vpop.f32.mrf.mxu0 }
 0x239   : > { %v793_v34 = vmax.f32 %v2371_v13, %v2373_v14 }
 0x23a   : > { %v2375_v15 = vpop.f32.mrf.mxu0 }
 0x23c   : > { %v2377_v16 = vpop.f32.mrf.mxu0 }
 0x23d   : > { %v796_v38 = vmax.f32 %v2375_v15, %v2377_v16 }
 0x23e   : > { %v2379_v17 = vpop.f32.mrf.mxu0 }
 0x240   : > { %v2381_v18 = vpop.f32.mrf.mxu0 }
 0x241   : > { %v799_v26 = vmax.f32 %v2379_v17, %v2381_v18 }
 0x242   : > { %v2383_v19 = vpop.f32.mrf.mxu0 }
 0x244   : > { %v2385_v20 = vpop.f32.mrf.mxu0 }
 0x245   : > { %v802_v30 = vmax.f32 %v2383_v19, %v2385_v20 }
 0x246   : > { %v2387_v21 = vpop.f32.mrf.mxu0 }
 0x248   : > { %v2389_v22 = vpop.f32.mrf.mxu0 }
 0x249   : > { %v805_v23 = vmax.f32 %v2387_v21, %v2389_v22 }
 0x24a   : > { %v2393_v24 = vpop.f32.mrf.mxu0 }
 0x24b   : > { %806 = vmax.xlane.f32.xlu0 %v805_v23  ;;  %v769_v23 = vmax.f32 %v2339_v61, %v2341_v62 }
 0x24c   : > { %v2395_v25 = vpop.f32.mrf.mxu0 }
 0x24d   : > { %v808_v27 = vmax.f32 %v2393_v24, %v2395_v25 }
 0x24e   : > { %v2401_v28 = vpop.f32.mrf.mxu0 }
 0x24f   : > { %2991 = vst [vmem:[#allocation11_spill] sm:$0xff] %v2401_v28  ;;  %800 = vmax.xlane.f32.xlu0 %v799_v26  ;;  %809 = vmax.xlane.f32.xlu1 %v808_v27 }
 0x250   : > { %v2403_v29 = vpop.f32.mrf.mxu0 }
 0x251   : > { %2992 = vst [vmem:[#allocation12_spill] sm:$0xff] %v2403_v29 }
 0x252   : > { %v2409_v32 = vpop.f32.mrf.mxu0 }
 0x253   : > { %2993 = vst [vmem:[#allocation13_spill] sm:$0xff] %v2409_v32  ;;  %803 = vmax.xlane.f32.xlu0 %v802_v30  ;;  %779 = vmax.xlane.f32.xlu1 %v778_v31  ;;  %v763_v30 = vmax.f32 %v2331_v57, %v2333_v58 }
 0x254   : > { %v2411_v33 = vpop.f32.mrf.mxu0 }
 0x255   : > { %2994 = vst [vmem:[#allocation14_spill] sm:$0xff] %v2411_v33 }
 0x256   : > { %v2417_v36 = vpop.f32.mrf.mxu0 }
 0x257   : > { %794 = vmax.xlane.f32.xlu0 %v793_v34  ;;  %773 = vmax.xlane.f32.xlu1 %v772_v35 }
 0x258   : > { %v2419_v37 = vpop.f32.mrf.mxu0 }
 0x25a   : > { %v2425_v40 = vpop.f32.mrf.mxu0 }
 0x25b   : > { %2995 = vst [vmem:[#allocation15_spill] sm:$0xff] %v2425_v40  ;;  %797 = vmax.xlane.f32.xlu0 %v796_v38  ;;  %767 = vmax.xlane.f32.xlu1 %v766_v39 }
 0x25c   : > { %v2427_v41 = vpop.f32.mrf.mxu0 }
 0x25e   : > { %v2431_v43 = vpop.f32.mrf.mxu0 }
 0x25f   : > { %788 = vmax.xlane.f32.xlu0 %v787_v42 }
 0x260   : > { %v2433_v44 = vpop.f32.mrf.mxu0 }
 0x262   : > { %v2437_v46 = vpop.f32.mrf.mxu0 }
 0x263   : > { %791 = vmax.xlane.f32.xlu0 %v790_v45 }
 0x264   : > { %v2439_v47 = vpop.f32.mrf.mxu0 }
 0x266   : > { %v2443_v49 = vpop.f32.mrf.mxu0 }
 0x267   : > { %782 = vmax.xlane.f32.xlu0 %v781_v48 }
 0x268   : > { %v2445_v50 = vpop.f32.mrf.mxu0 }
 0x26a   : > { %v2449_v52 = vpop.f32.mrf.mxu0 }
 0x26b   : > { %785 = vmax.xlane.f32.xlu0 %v784_v51 }
 0x26c   : > { %v2451_v53 = vpop.f32.mrf.mxu0 }
 0x26e   : > { %v2455_v55 = vpop.f32.mrf.mxu0 }
 0x26f   : > { %776 = vmax.xlane.f32.xlu0 %v775_v54 }
 0x270   : > { %v2457_v56 = vpop.f32.mrf.mxu0 }
 0x271   : > { %2996 = vst [vmem:[#allocation16_spill] sm:$0xff] %v2457_v56 }
 0x272   : > { %v2461_v26 = vpop.f32.mrf.mxu0 }
 0x273   : > { %2997 = vst [vmem:[#allocation17_spill] sm:$0xff] %v2461_v26  ;;  %770 = vmax.xlane.f32.xlu0 %v769_v23 }
 0x274   : > { %v2463_v27 = vpop.f32.mrf.mxu0 }
 0x275   : > { %2998 = vst [vmem:[#allocation18_spill] sm:$0xff] %v2463_v27 }
 0x276   : > { %v2467_v31 = vpop.f32.mrf.mxu0 }
 0x277   : > { %2999 = vst [vmem:[#allocation19_spill] sm:$0xff] %v2467_v31  ;;  %764 = vmax.xlane.f32.xlu0 %v763_v30 }
 0x278   : > { %v2469_v34 = vpop.f32.mrf.mxu0 }
 0x279   : > { %3000 = vst [vmem:[#allocation20_spill] sm:$0xff] %v2469_v34  ;;  %v841_v29 = vmax.f32 %v2467_v31, %v2469_v34 }
 0x27a   : > { %v2471_v35 = vpop.f32.mrf.mxu0 }
 0x27b   : > { %3001 = vst [vmem:[#allocation21_spill] sm:$0xff] %v2471_v35 }
 0x27c   : > { %v2473_v38 = vpop.f32.mrf.mxu0 }
 0x27d   : > { %3002 = vst [vmem:[#allocation22_spill] sm:$0xff] %v2473_v38 }
 0x27e   : > { %v2475_v39 = vpop.f32.mrf.mxu0 }
 0x280   : > { %v2477_v42 = vpop.f32.mrf.mxu0 }
 0x281   : > { %3003 = vst [vmem:[#allocation23_spill] sm:$0xff] %v2477_v42  ;;  %v847_v32 = vmax.f32 %v2475_v39, %v2477_v42  ;;  %v844_v42 = vmax.f32 %v2471_v35, %v2473_v38 }
 0x282   : > { %v2479_v45 = vpop.f32.mrf.mxu0 }
 0x283   : > { %3004 = vst [vmem:[#allocation24_spill] sm:$0xff] %v2479_v45 }
 0x284   : > { %v2481_v48 = vpop.f32.mrf.mxu0 }
 0x285   : > { %3005 = vst [vmem:[#allocation25_spill] sm:$0xff] %v2481_v48  ;;  %v850_v40 = vmax.f32 %v2479_v45, %v2481_v48 }
 0x286   : > { %v2483_v51 = vpop.f32.mrf.mxu0 }
 0x288   : > { %v2485_v54 = vpop.f32.mrf.mxu0 }
 0x289   : > { %v853_v23 = vmax.f32 %v2483_v51, %v2485_v54 }
 0x28a   : > { %v2489_v30 = vpop.f32.mrf.mxu0 }
 0x28b   : > { %854 = vmax.xlane.f32.xlu0 %v853_v23  ;;  %v835_v23 = vmax.f32 %v2455_v55, %v2457_v56 }
 0x28c   : > { %v2493_v33 = vpop.f32.mrf.mxu0 }
 0x28d   : > { %v856_v28 = vmax.f32 %v2489_v30, %v2493_v33 }
 0x28f   : > { %848 = vmax.xlane.f32.xlu0 %v847_v32  ;;  %857 = vmax.xlane.f32.xlu1 %v856_v28  ;;  %v838_v32 = vmax.f32 %v2461_v26, %v2463_v27 }
 0x293   : > { %842 = vmax.xlane.f32.xlu0 %v841_v29  ;;  %851 = vmax.xlane.f32.xlu1 %v850_v40 }
 0x297   : > { %836 = vmax.xlane.f32.xlu0 %v835_v23  ;;  %845 = vmax.xlane.f32.xlu1 %v844_v42 }
 0x29b   : > { %839 = vmax.xlane.f32.xlu1 %v838_v32 }
 0x2d4   : > { %v807_v28 = vpop.xlane.xlu0 %806 }
 0x2d5   : > { %v887_v34 = vsub.f32 %v2387_v21, %v807_v28  ;;  %v888_v31 = vsub.f32 %v2389_v22, %v807_v28 }
 0x2d7   : > { %v979_v48 = vmul.f32 1.442695, %v887_v34  ;;  %v981_v29 = vmul.f32 1.442695, %v888_v31 }
 0x2d8   : > { %v801_v40 = vpop.xlane.xlu0 %800  ;;  %v810_v45 = vpop.xlane.xlu1 %809 }
 0x2d9   : > { %1860 = vpow2.f32 %v979_v48  ;;  %v883_v56 = vsub.f32 %v2379_v17, %v801_v40  ;;  %v884_v38 = vsub.f32 %v2381_v18, %v801_v40  ;;  %v889_v42 = vsub.f32 %v2393_v24, %v810_v45 }
 0x2da   : > { %1862 = vpow2.f32 %v981_v29  ;;  %v890_v23 = vsub.f32 %v2395_v25, %v810_v45 }
 0x2db   : > { %v971_v32 = vmul.f32 1.442695, %v883_v56  ;;  %v973_v27 = vmul.f32 1.442695, %v884_v38  ;;  %v983_v26 = vmul.f32 1.442695, %v889_v42 }
 0x2dc   : > { %v985_v21 = vmul.f32 1.442695, %v890_v23  ;;  %v804_v35 = vpop.xlane.xlu0 %803 }
 0x2dd   : > { %1864 = vpow2.f32 %v971_v32  ;;  %v885_v22 = vsub.f32 %v2383_v19, %v804_v35  ;;  %v886_v31 = vsub.f32 %v2385_v20, %v804_v35 }
 0x2de   : > { %1866 = vpow2.f32 %v973_v27 }
 0x2df   : > { %1868 = vpow2.f32 %v983_v26  ;;  %v975_v18 = vmul.f32 1.442695, %v885_v22  ;;  %v977_v25 = vmul.f32 1.442695, %v886_v31 }
 0x2e0   : > { %1870 = vpow2.f32 %v985_v21  ;;  %v795_v17 = vpop.xlane.xlu0 %794  ;;  %v829_v21 = vmax.f32 %v2443_v49, %v2445_v50 }
 0x2e1   : > { %v879_v24 = vsub.f32 %v2371_v13, %v795_v17  ;;  %v880_v34 = vsub.f32 %v2373_v14, %v795_v17  ;;  %1872 = vpow2.f32 %v975_v18 }
 0x2e2   : > { %1874 = vpow2.f32 %v977_v25 }
 0x2e3   : > { %v963_v56 = vmul.f32 1.442695, %v879_v24  ;;  %v965_v38 = vmul.f32 1.442695, %v880_v34 }
 0x2e4   : > { %v798_v45 = vpop.xlane.xlu0 %797 }
 0x2e5   : > { %v881_v48 = vsub.f32 %v2375_v15, %v798_v45  ;;  %v882_v19 = vsub.f32 %v2377_v16, %v798_v45  ;;  %1876 = vpow2.f32 %v963_v56  ;;  %v780_v56 = vpop.xlane.xlu1 %779 }
 0x2e6   : > { %v2518_v28 = vpop.eup %1860  ;;  %1878 = vpow2.f32 %v965_v38  ;;  %v832_v38 = vmax.f32 %v2449_v52, %v2451_v53 }
 0x2e7   : > { %v2521_v20 = vpop.eup %1862  ;;  %v967_v14 = vmul.f32 1.442695, %v881_v48  ;;  %v969_v15 = vmul.f32 1.442695, %v882_v19 }
 0x2e8   : > { %v789_v26 = vpop.xlane.xlu0 %788  ;;  %v1093_v13 = vadd.f32 %v2521_v20, %v2518_v28 }
 0x2e9   : > { %v875_v27 = vsub.f32 %v2363_v9, %v789_v26  ;;  %v876_v35 = vsub.f32 %v2365_v10, %v789_v26  ;;  %1880 = vpow2.f32 %v967_v14 }
 0x2ea   : > { %v2527_v29 = vpop.eup %1864  ;;  %1094 = vadd.xlane.f32.xlu0 %v1093_v13  ;;  %1882 = vpow2.f32 %v969_v15 }
 0x2eb   : > { %v2529_v40 = vpop.eup %1866  ;;  %v955_v16 = vmul.f32 1.442695, %v875_v27  ;;  %v957_v23 = vmul.f32 1.442695, %v876_v35  ;;  %v869_v35 = vsub.f32 %v2351_v3, %v780_v56 }
 0x2ec   : > { %v2531_v42 = vpop.eup %1868  ;;  %v792_v32 = vpop.xlane.xlu0 %791  ;;  %v1087_v18 = vadd.f32 %v2529_v40, %v2527_v29 }
 0x2ed   : > { %v2535_v22 = vpop.eup %1870  ;;  %v877_v9 = vsub.f32 %v2367_v11, %v792_v32  ;;  %v878_v10 = vsub.f32 %v2369_v12, %v792_v32  ;;  %1884 = vpow2.f32 %v955_v16  ;;  %v774_v32 = vpop.xlane.xlu1 %773 }
 0x2ee   : > { %830 = vmax.xlane.f32.xlu0 %v829_v21  ;;  %v1096_v31 = vadd.f32 %v2535_v22, %v2531_v42  ;;  %1886 = vpow2.f32 %v957_v23  ;;  %v2545_v11 = vpop.eup %1872  ;;  %v870_v23 = vsub.f32 %v2353_v4, %v780_v56 }
 0x2ef   : > { %v959_v24 = vmul.f32 1.442695, %v877_v9  ;;  %v961_v12 = vmul.f32 1.442695, %v878_v10  ;;  %v2549_v45 = vpop.eup %1874 }
 0x2f0   : > { %1097 = vadd.xlane.f32.xlu1 %v1096_v31  ;;  %v783_v17 = vpop.xlane.xlu0 %782  ;;  %v1090_v15 = vadd.f32 %v2549_v45, %v2545_v11  ;;  %v943_v31 = vmul.f32 1.442695, %v869_v35  ;;  %v945_v56 = vmul.f32 1.442695, %v870_v23 }
 0x2f1   : > { %v871_v34 = vsub.f32 %v2355_v5, %v783_v17  ;;  %v872_v25 = vsub.f32 %v2357_v6, %v783_v17  ;;  %v823_v5 = vmax.f32 %v2431_v43, %v2433_v44  ;;  %1888 = vpow2.f32 %v959_v24 }
 0x2f2   : > { %1088 = vadd.xlane.f32.xlu0 %v1087_v18  ;;  %v2551_v19 = vpop.eup %1876  ;;  %1890 = vpow2.f32 %v961_v12  ;;  %v826_v17 = vmax.f32 %v2437_v46, %v2439_v47  ;;  %v865_v18 = vsub.f32 %v2343_v63, %v774_v32  ;;  %v817_v12 = vmax.f32 %v2417_v36, %v2419_v37 }
 0x2f3   : > { %v947_v48 = vmul.f32 1.442695, %v871_v34  ;;  %v949_v26 = vmul.f32 1.442695, %v872_v25  ;;  %v2555_v6 = vpop.eup %1878 }
 0x2f4   : > { %833 = vmax.xlane.f32.xlu1 %v832_v38  ;;  %v786_v13 = vpop.xlane.xlu0 %785 }
 0x2f5   : > { %v873_v14 = vsub.f32 %v2359_v7, %v786_v13  ;;  %v874_v27 = vsub.f32 %v2361_v8, %v786_v13  ;;  %1892 = vpow2.f32 %v947_v48  ;;  %v1081_v7 = vadd.f32 %v2555_v6, %v2551_v19 }
 0x2f6   : > { %824 = vmax.xlane.f32.xlu0 %v823_v5  ;;  %1894 = vpow2.f32 %v949_v26  ;;  %v2567_v10 = vpop.eup %1880  ;;  %v768_v26 = vpop.xlane.xlu1 %767 }
 0x2f7   : > { %v951_v16 = vmul.f32 1.442695, %v873_v14  ;;  %v953_v21 = vmul.f32 1.442695, %v874_v27  ;;  %v2571_v4 = vpop.eup %1882 }
 0x2f8   : > { %1091 = vadd.xlane.f32.xlu1 %v1090_v15  ;;  %v777_v9 = vpop.xlane.xlu0 %776  ;;  %v1084_v13 = vadd.f32 %v2571_v4, %v2567_v10 }
 0x2f9   : > { %v867_v8 = vsub.f32 %v2347_v1, %v777_v9  ;;  %v868_v3 = vsub.f32 %v2349_v2, %v777_v9  ;;  %1896 = vpow2.f32 %v951_v16  ;;  %v866_v1 = vsub.f32 %v2345_v0, %v774_v32 }
 0x2fa   : > { %1082 = vadd.xlane.f32.xlu0 %v1081_v7  ;;  %v2574_v25 = vpop.eup %1884  ;;  %1898 = vpow2.f32 %v953_v21  ;;  %v935_v0 = vmul.f32 1.442695, %v865_v18  ;;  %v862_v32 = vsub.f32 %v2337_v60, %v768_v26  ;;  %v3006_v21 = vld [vmem:[#allocation15_spill] sm:$0xff] }
 0x2fb   : > { %v939_v24 = vmul.f32 1.442695, %v867_v8  ;;  %v941_v34 = vmul.f32 1.442695, %v868_v3  ;;  %v2579_v38 = vpop.eup %1886  ;;  %v937_v27 = vmul.f32 1.442695, %v866_v1  ;;  %v820_v9 = vmax.f32 %v3006_v21, %v2427_v41 }
 0x2fc   : > { %827 = vmax.xlane.f32.xlu1 %v826_v17  ;;  %v771_v2 = vpop.xlane.xlu0 %770  ;;  %v1075_v15 = vadd.f32 %v2579_v38, %v2574_v25  ;;  %v929_v18 = vmul.f32 1.442695, %v862_v32 }
 0x2fd   : > { %1900 = vpow2.f32 %v939_v24  ;;  %v863_v48 = vsub.f32 %v2339_v61, %v771_v2  ;;  %v864_v63 = vsub.f32 %v2341_v62, %v771_v2  ;;  %v861_v61 = vsub.f32 %v2335_v59, %v768_v26 }
 0x2fe   : > { %1902 = vpow2.f32 %v941_v34  ;;  %818 = vmax.xlane.f32.xlu0 %v817_v12  ;;  %v2590_v23 = vpop.eup %1888  ;;  %v3009_v12 = vld [vmem:[#allocation14_spill] sm:$0xff] }
 0x2ff   : > { %1904 = vpow2.f32 %v943_v31  ;;  %v931_v5 = vmul.f32 1.442695, %v863_v48  ;;  %v933_v14 = vmul.f32 1.442695, %v864_v63  ;;  %v2595_v7 = vpop.eup %1890  ;;  %v927_v60 = vmul.f32 1.442695, %v861_v61 }
 0x300   : > { %1906 = vpow2.f32 %v945_v56  ;;  %1085 = vadd.xlane.f32.xlu1 %v1084_v13  ;;  %v765_v35 = vpop.xlane.xlu0 %764  ;;  %v1078_v24 = vadd.f32 %v2595_v7, %v2590_v23  ;;  %v3010_v48 = vld [vmem:[#allocation13_spill] sm:$0xff] }
 0x301   : > { %1908 = vpow2.f32 %v931_v5  ;;  %v859_v62 = vsub.f32 %v2331_v57, %v765_v35  ;;  %v860_v16 = vsub.f32 %v2333_v58, %v765_v35  ;;  %v3007_v57 = vld [vmem:[#allocation12_spill] sm:$0xff]  ;;  %v3008_v58 = vld [vmem:[#allocation11_spill] sm:$0xff]  ;;  %v814_v63 = vmax.f32 %v3010_v48, %v3009_v12 }
 0x302   : > { %1910 = vpow2.f32 %v933_v14  ;;  %1076 = vadd.xlane.f32.xlu0 %v1075_v15  ;;  %v2597_v59 = vpop.eup %1892  ;;  %v811_v31 = vmax.f32 %v3008_v58, %v3007_v57 }
 0x303   : > { %1912 = vpow2.f32 %v935_v0  ;;  %v923_v8 = vmul.f32 1.442695, %v859_v62  ;;  %v925_v3 = vmul.f32 1.442695, %v860_v16  ;;  %v2601_v17 = vpop.eup %1894 }
 0x304   : > { %1914 = vpow2.f32 %v937_v27  ;;  %821 = vmax.xlane.f32.xlu1 %v820_v9  ;;  %v1069_v56 = vadd.f32 %v2601_v17, %v2597_v59 }
 0x305   : > { %1916 = vpow2.f32 %v923_v8 }
 0x306   : > { %1918 = vpow2.f32 %v925_v3  ;;  %812 = vmax.xlane.f32.xlu0 %v811_v31  ;;  %v2605_v34 = vpop.eup %1896 }
 0x307   : > { %v2609_v1 = vpop.eup %1898  ;;  %1920 = vpow2.f32 %v927_v60 }
 0x308   : > { %1079 = vadd.xlane.f32.xlu1 %v1078_v24  ;;  %1922 = vpow2.f32 %v929_v18  ;;  %v1072_v27 = vadd.f32 %v2609_v1, %v2605_v34 }
 0x30a   : > { %v2611_v2 = vpop.eup %1900  ;;  %1070 = vadd.xlane.f32.xlu0 %v1069_v56 }
 0x30b   : > { %v2615_v26 = vpop.eup %1902 }
 0x30c   : > { %v2617_v13 = vpop.eup %1904  ;;  %815 = vmax.xlane.f32.xlu1 %v814_v63  ;;  %v1063_v0 = vadd.f32 %v2615_v26, %v2611_v2 }
 0x30d   : > { %v2621_v5 = vpop.eup %1906 }
 0x30e   : > { %3011 = vst [vmem:[#allocation15_spill] sm:$0xff] %v2621_v5  ;;  %v2623_v14 = vpop.eup %1908  ;;  %1064 = vadd.xlane.f32.xlu0 %v1063_v0  ;;  %v1066_v32 = vadd.f32 %v2621_v5, %v2617_v13  ;;  %v3020_v5 = vld [vmem:[#allocation20_spill] sm:$0xff] }
 0x30f   : > { %v2627_v35 = vpop.eup %1910 }
 0x310   : > { %v2629_v15 = vpop.eup %1912  ;;  %1073 = vadd.xlane.f32.xlu1 %v1072_v27  ;;  %v1057_v61 = vadd.f32 %v2627_v35, %v2623_v14 }
 0x311   : > { %3012 = vst [vmem:[#allocation12_spill] sm:$0xff] %v2629_v15  ;;  %v2633_v62 = vpop.eup %1914 }
 0x312   : > { %3013 = vst [vmem:[#allocation11_spill] sm:$0xff] %v2633_v62  ;;  %v2635_v16 = vpop.eup %1916  ;;  %1058 = vadd.xlane.f32.xlu0 %v1057_v61  ;;  %v1060_v24 = vadd.f32 %v2633_v62, %v2629_v15 }
 0x313   : > { %3014 = vst [vmem:[#allocation14_spill] sm:$0xff] %v2635_v16  ;;  %v2639_v9 = vpop.eup %1918 }
 0x314   : > { %3015 = vst [vmem:[#allocation13_spill] sm:$0xff] %v2639_v9  ;;  %1067 = vadd.xlane.f32.xlu1 %v1066_v32  ;;  %v855_v8 = vpop.xlane.xlu0 %854  ;;  %v1051_v3 = vadd.f32 %v2639_v9, %v2635_v16  ;;  %v2645_v18 = vpop.eup %1920  ;;  %v3018_v9 = vld [vmem:[#allocation23_spill] sm:$0xff] }
 0x315   : > { %v919_v31 = vsub.f32 %v2483_v51, %v855_v8  ;;  %v920_v60 = vsub.f32 %v2485_v54, %v855_v8  ;;  %3016 = vst [vmem:[#allocation26_spill] sm:$0xff] %v2645_v18  ;;  %v2649_v56 = vpop.eup %1922 }
 0x316   : > { %1052 = vadd.xlane.f32.xlu0 %v1051_v3  ;;  %3017 = vst [vmem:[#allocation27_spill] sm:$0xff] %v2649_v56  ;;  %v1054_v3 = vadd.f32 %v2649_v56, %v2645_v18  ;;  %v3024_v18 = vld [vmem:[#allocation21_spill] sm:$0xff] }
 0x317   : > { %v1043_v63 = vmul.f32 1.442695, %v919_v31  ;;  %v1045_v0 = vmul.f32 1.442695, %v920_v60 }
 0x318   : > { %1061 = vadd.xlane.f32.xlu1 %v1060_v24  ;;  %v849_v27 = vpop.xlane.xlu0 %848  ;;  %v858_v61 = vpop.xlane.xlu1 %857 }
 0x319   : > { %1924 = vpow2.f32 %v1043_v63  ;;  %v915_v32 = vsub.f32 %v2475_v39, %v849_v27  ;;  %v916_v51 = vsub.f32 %v3018_v9, %v849_v27  ;;  %v921_v54 = vsub.f32 %v2489_v30, %v858_v61  ;;  %v3019_v63 = vld [vmem:[#allocation19_spill] sm:$0xff]  ;;  %v3021_v27 = vld [vmem:[#allocation24_spill] sm:$0xff] }
 0x31a   : > { %1926 = vpow2.f32 %v1045_v0  ;;  %v922_v8 = vsub.f32 %v2493_v33, %v858_v61  ;;  %v3022_v0 = vld [vmem:[#allocation25_spill] sm:$0xff] }
 0x31b   : > { %v1035_v62 = vmul.f32 1.442695, %v915_v32  ;;  %v1037_v15 = vmul.f32 1.442695, %v916_v51  ;;  %v1047_v31 = vmul.f32 1.442695, %v921_v54 }
 0x31c   : > { %v1049_v60 = vmul.f32 1.442695, %v922_v8  ;;  %1055 = vadd.xlane.f32.xlu1 %v1054_v3  ;;  %v843_v24 = vpop.xlane.xlu0 %842  ;;  %v852_v16 = vpop.xlane.xlu1 %851  ;;  %v3023_v3 = vld [vmem:[#allocation16_spill] sm:$0xff] }
 0x31d   : > { %1928 = vpow2.f32 %v1035_v62  ;;  %v911_v39 = vsub.f32 %v3019_v63, %v843_v24  ;;  %v912_v9 = vsub.f32 %v3020_v5, %v843_v24  ;;  %v917_v30 = vsub.f32 %v3021_v27, %v852_v16  ;;  %v3025_v24 = vld [vmem:[#allocation22_spill] sm:$0xff]  ;;  %v3026_v27 = vld [vmem:[#allocation17_spill] sm:$0xff] }
 0x31e   : > { %1930 = vpow2.f32 %v1037_v15  ;;  %v918_v33 = vsub.f32 %v3022_v0, %v852_v16  ;;  %v3027_v0 = vld [vmem:[#allocation18_spill] sm:$0xff] }
 0x31f   : > { %1932 = vpow2.f32 %v1047_v31  ;;  %v1027_v61 = vmul.f32 1.442695, %v911_v39  ;;  %v1029_v56 = vmul.f32 1.442695, %v912_v9  ;;  %v1039_v32 = vmul.f32 1.442695, %v917_v30 }
 0x320   : > { %1934 = vpow2.f32 %v1049_v60  ;;  %v1041_v51 = vmul.f32 1.442695, %v918_v33  ;;  %v837_v54 = vpop.xlane.xlu0 %836  ;;  %v846_v8 = vpop.xlane.xlu1 %845 }
 0x321   : > { %1936 = vpow2.f32 %v1027_v61  ;;  %v907_v62 = vsub.f32 %v2455_v55, %v837_v54  ;;  %v908_v63 = vsub.f32 %v3023_v3, %v837_v54  ;;  %v913_v5 = vsub.f32 %v3024_v18, %v846_v8 }
 0x322   : > { %1938 = vpow2.f32 %v1029_v56  ;;  %v914_v15 = vsub.f32 %v3025_v24, %v846_v8 }
 0x323   : > { %1940 = vpow2.f32 %v1039_v32  ;;  %v1019_v16 = vmul.f32 1.442695, %v907_v62  ;;  %v1021_v31 = vmul.f32 1.442695, %v908_v63  ;;  %v1031_v39 = vmul.f32 1.442695, %v913_v5 }
 0x324   : > { %1942 = vpow2.f32 %v1041_v51  ;;  %v1033_v9 = vmul.f32 1.442695, %v914_v15  ;;  %v840_v60 = vpop.xlane.xlu1 %839 }
 0x325   : > { %1944 = vpow2.f32 %v1019_v16  ;;  %v909_v30 = vsub.f32 %v3026_v27, %v840_v60  ;;  %v910_v33 = vsub.f32 %v3027_v0, %v840_v60 }
 0x326   : > { %v2667_v55 = vpop.eup %1924  ;;  %1946 = vpow2.f32 %v1021_v31 }
 0x327   : > { %v2669_v61 = vpop.eup %1926  ;;  %1948 = vpow2.f32 %v1031_v39  ;;  %v1023_v18 = vmul.f32 1.442695, %v909_v30  ;;  %v1025_v56 = vmul.f32 1.442695, %v910_v33 }
 0x328   : > { %1950 = vpow2.f32 %v1033_v9  ;;  %v1141_v32 = vadd.f32 %v2669_v61, %v2667_v55 }
 0x329   : > { %1952 = vpow2.f32 %v1023_v18 }
 0x32a   : > { %v2673_v51 = vpop.eup %1928  ;;  %1954 = vpow2.f32 %v1025_v56  ;;  %1142 = vadd.xlane.f32.xlu0 %v1141_v32 }
 0x32b   : > { %v2675_v54 = vpop.eup %1930 }
 0x32c   : > { %v2677_v8 = vpop.eup %1932  ;;  %v1135_v62 = vadd.f32 %v2675_v54, %v2673_v51 }
 0x32d   : > { %v2681_v3 = vpop.eup %1934 }
 0x32e   : > { %v2683_v63 = vpop.eup %1936  ;;  %1136 = vadd.xlane.f32.xlu0 %v1135_v62  ;;  %v1144_v5 = vadd.f32 %v2681_v3, %v2677_v8 }
 0x32f   : > { %v2687_v24 = vpop.eup %1938 }
 0x330   : > { %v2689_v15 = vpop.eup %1940  ;;  %1145 = vadd.xlane.f32.xlu1 %v1144_v5  ;;  %v1129_v16 = vadd.f32 %v2687_v24, %v2683_v63 }
 0x331   : > { %v2693_v31 = vpop.eup %1942 }
 0x332   : > { %v2695_v39 = vpop.eup %1944  ;;  %1130 = vadd.xlane.f32.xlu0 %v1129_v16  ;;  %v1138_v9 = vadd.f32 %v2693_v31, %v2689_v15 }
 0x333   : > { %3028 = vst [vmem:[#allocation23_spill] sm:$0xff] %v2695_v39  ;;  %v2699_v60 = vpop.eup %1946 }
 0x334   : > { %3029 = vst [vmem:[#allocation19_spill] sm:$0xff] %v2699_v60  ;;  %v2701_v27 = vpop.eup %1948  ;;  %1139 = vadd.xlane.f32.xlu1 %v1138_v9  ;;  %v1123_v30 = vadd.f32 %v2699_v60, %v2695_v39 }
 0x335   : > { %v2705_v0 = vpop.eup %1950 }
 0x336   : > { %3030 = vst [vmem:[#allocation20_spill] sm:$0xff] %v2705_v0  ;;  %v2707_v33 = vpop.eup %1952  ;;  %1124 = vadd.xlane.f32.xlu0 %v1123_v30  ;;  %v1132_v18 = vadd.f32 %v2705_v0, %v2701_v27 }
 0x337   : > { %3031 = vst [vmem:[#allocation24_spill] sm:$0xff] %v2707_v33  ;;  %v2711_v56 = vpop.eup %1954 }
 0x338   : > { %3032 = vst [vmem:[#allocation25_spill] sm:$0xff] %v2711_v56  ;;  %1133 = vadd.xlane.f32.xlu1 %v1132_v18  ;;  %v1126_v32 = vadd.f32 %v2711_v56, %v2707_v33 }
 0x33c   : > { %1127 = vadd.xlane.f32.xlu1 %v1126_v32 }
 0x373   : > { %v1095_v62 = vpop.xlane.xlu0 %1094 }
 0x374   : > { %1956 = vrcp.f32 %v1095_v62 }
 0x377   : > { %v831_v5 = vpop.xlane.xlu0 %830 }
 0x378   : > { %v903_v16 = vsub.f32 %v2443_v49, %v831_v5  ;;  %v904_v9 = vsub.f32 %v2445_v50, %v831_v5 }
 0x379   : > { %v1098_v60 = vpop.xlane.xlu1 %1097 }
 0x37a   : > { %v1011_v30 = vmul.f32 1.442695, %v903_v16  ;;  %v1013_v39 = vmul.f32 1.442695, %v904_v9  ;;  %1958 = vrcp.f32 %v1098_v60 }
 0x37b   : > { %v1089_v0 = vpop.xlane.xlu0 %1088 }
 0x37c   : > { %1960 = vpow2.f32 %v1011_v30 }
 0x37d   : > { %1962 = vpow2.f32 %v1013_v39  ;;  %v834_v18 = vpop.xlane.xlu1 %833 }
 0x37e   : > { %1964 = vrcp.f32 %v1089_v0  ;;  %v905_v56 = vsub.f32 %v2449_v52, %v834_v18  ;;  %v906_v32 = vsub.f32 %v2451_v53, %v834_v18 }
 0x37f   : > { %v825_v62 = vpop.xlane.xlu0 %824 }
 0x380   : > { %v1015_v49 = vmul.f32 1.442695, %v905_v56  ;;  %v1017_v33 = vmul.f32 1.442695, %v906_v32  ;;  %v899_v50 = vsub.f32 %v2431_v43, %v825_v62  ;;  %v900_v5 = vsub.f32 %v2433_v44, %v825_v62 }
 0x381   : > { %v1957_v60 = vpop.eup %1956  ;;  %v1092_v16 = vpop.xlane.xlu1 %1091 }
 0x382   : > { %1966 = vpow2.f32 %v1015_v49  ;;  %v1003_v39 = vmul.f32 1.442695, %v899_v50  ;;  %v1005_v0 = vmul.f32 1.442695, %v900_v5  ;;  %v1207_v52 = vmul.f32 %v1957_v60, %v2518_v28 }
 0x383   : > { %1968 = vpow2.f32 %v1017_v33  ;;  %v1083_v53 = vpop.xlane.xlu0 %1082  ;;  %v1208_v9 = vmul.f32 %v1957_v60, %v2521_v20 }
 0x384   : > { %1970 = vpow2.f32 %v1003_v39 }
 0x385   : > { %1972 = vpow2.f32 %v1005_v0  ;;  %v828_v56 = vpop.xlane.xlu1 %827  ;;  %v1775_v30 = vpack.c.bf16 %v1208_v9, %v1207_v52 }
 0x386   : > { %1974 = vrcp.f32 %v1092_v16  ;;  %v901_v43 = vsub.f32 %v2437_v46, %v828_v56  ;;  %v902_v44 = vsub.f32 %v2439_v47, %v828_v56 }
 0x387   : > { %v1959_v18 = vpop.eup %1958  ;;  %1976 = vrcp.f32 %v1083_v53  ;;  %v819_v32 = vpop.xlane.xlu0 %818  ;;  %1517 = vst [vmem:[%s2729_s17 + $0x70] sm:$0xff] %v1775_v30 }
 0x388   : > { %v1007_v28 = vmul.f32 1.442695, %v901_v43  ;;  %v1009_v33 = vmul.f32 1.442695, %v902_v44  ;;  %v895_v20 = vsub.f32 %v2417_v36, %v819_v32  ;;  %v896_v62 = vsub.f32 %v2419_v37, %v819_v32 }
 0x389   : > { %v2734_v49 = vpop.eup %1960  ;;  %v1086_v50 = vpop.xlane.xlu1 %1085  ;;  %v1209_v46 = vmul.f32 %v1959_v18, %v2531_v42  ;;  %v1210_v47 = vmul.f32 %v1959_v18, %v2535_v22 }
 0x38a   : > { %v2738_v5 = vpop.eup %1962  ;;  %1978 = vpow2.f32 %v1007_v28  ;;  %v995_v60 = vmul.f32 1.442695, %v895_v20  ;;  %v997_v16 = vmul.f32 1.442695, %v896_v62 }
 0x38b   : > { %v1965_v39 = vpop.eup %1964  ;;  %1980 = vpow2.f32 %v1009_v33  ;;  %v1258_v0 = vpack.c.bf16 %v1210_v47, %v1208_v9  ;;  %v1776_v53 = vpack.c.bf16 %v1210_v47, %v1209_v46  ;;  %v1077_v36 = vpop.xlane.xlu0 %1076  ;;  %v1257_v56 = vpack.c.bf16 %v1209_v46, %v1207_v52 }
 0x38c   : > { %1982 = vpow2.f32 %v995_v60  ;;  %v1117_v37 = vadd.f32 %v2738_v5, %v2734_v49  ;;  %v1203_v42 = vmul.f32 %v1965_v39, %v2527_v29  ;;  %v1204_v22 = vmul.f32 %v1965_v39, %v2529_v40 }
 0x38d   : > { %1984 = vpow2.f32 %v997_v16  ;;  %1287 = vmatprep.subr.bf16.mxu1 %v1258_v0  ;;  %1518 = vst [vmem:[%s2729_s17 + $0x78] sm:$0xff] %v1776_v53  ;;  %v822_v30 = vpop.xlane.xlu1 %821 }
 0x38e   : > { %1986 = vrcp.f32 %v1086_v50  ;;  %1288 = vmatpush1.bf16.xpose.msra.mxu1 %v1257_v56  ;;  %v897_v9 = vsub.f32 %v3006_v21, %v822_v30  ;;  %v898_v43 = vsub.f32 %v2427_v41, %v822_v30  ;;  %1118 = vadd.xlane.f32.xlu0 %v1117_v37  ;;  %v1773_v52 = vpack.c.bf16 %v1204_v22, %v1203_v42 }
 0x38f   : > { %v2747_v44 = vpop.eup %1966  ;;  %1988 = vrcp.f32 %v1077_v36  ;;  %v813_v18 = vpop.xlane.xlu0 %812 }
 0x390   : > { %v2749_v29 = vpop.eup %1968  ;;  %v999_v40 = vmul.f32 1.442695, %v897_v9  ;;  %v1001_v32 = vmul.f32 1.442695, %v898_v43  ;;  %v891_v28 = vsub.f32 %v3008_v58, %v813_v18  ;;  %v892_v33 = vsub.f32 %v3007_v57, %v813_v18  ;;  %1515 = vst [vmem:[%s2729_s17 + $0x60] sm:$0xff] %v1773_v52 }
 0x391   : > { %v2754_v20 = vpop.eup %1970  ;;  %v1080_v21 = vpop.xlane.xlu1 %1079  ;;  %v1120_v41 = vadd.f32 %v2749_v29, %v2747_v44 }
 0x392   : > { %v2758_v62 = vpop.eup %1972  ;;  %1990 = vpow2.f32 %v999_v40  ;;  %v987_v50 = vmul.f32 1.442695, %v891_v28  ;;  %v989_v46 = vmul.f32 1.442695, %v892_v33 }
 0x393   : > { %v1975_v47 = vpop.eup %1974  ;;  %1992 = vpow2.f32 %v1001_v32  ;;  %1121 = vadd.xlane.f32.xlu1 %v1120_v41  ;;  %v1071_v60 = vpop.xlane.xlu0 %1070  ;;  %v1111_v58 = vadd.f32 %v2758_v62, %v2754_v20 }
 0x394   : > { %v1977_v57 = vpop.eup %1976  ;;  %1994 = vpow2.f32 %v987_v50  ;;  %v1205_v16 = vmul.f32 %v1975_v47, %v2545_v11  ;;  %v1206_v39 = vmul.f32 %v1975_v47, %v2549_v45 }
 0x395   : > { %1996 = vpow2.f32 %v989_v46  ;;  %v816_v0 = vpop.xlane.xlu1 %815  ;;  %1112 = vadd.xlane.f32.xlu0 %v1111_v58  ;;  %v1199_v53 = vmul.f32 %v1977_v57, %v2551_v19  ;;  %v1200_v36 = vmul.f32 %v1977_v57, %v2555_v6 }
 0x396   : > { %1998 = vrcp.f32 %v1080_v21  ;;  %v1256_v56 = vpack.c.bf16 %v1206_v39, %v1204_v22  ;;  %v1774_v37 = vpack.c.bf16 %v1206_v39, %v1205_v16  ;;  %v1255_v30 = vpack.c.bf16 %v1205_v16, %v1203_v42 }
 0x397   : > { %v2766_v9 = vpop.eup %1978  ;;  %2000 = vrcp.f32 %v1071_v60  ;;  %v893_v11 = vsub.f32 %v3010_v48, %v816_v0  ;;  %v894_v45 = vsub.f32 %v3009_v12, %v816_v0  ;;  %v1065_v43 = vpop.xlane.xlu0 %1064  ;;  %v1771_v52 = vpack.c.bf16 %v1200_v36, %v1199_v53 }
 0x398   : > { %v2770_v18 = vpop.eup %1980  ;;  %1289 = vmatprep.subr.bf16.mxu1 %v1256_v56  ;;  %1516 = vst [vmem:[%s2729_s17 + $0x68] sm:$0xff] %v1774_v37  ;;  %2002 = vrcp.f32 %v1065_v43 }
 0x399   : > { %v2773_v19 = vpop.eup %1982  ;;  %1290 = vmatpush1.bf16.xpose.msra.mxu1 %v1255_v30  ;;  %v991_v6 = vmul.f32 1.442695, %v893_v11  ;;  %v993_v42 = vmul.f32 1.442695, %v894_v45  ;;  %v1074_v22 = vpop.xlane.xlu1 %1073  ;;  %v1114_v40 = vadd.f32 %v2770_v18, %v2766_v9  ;;  %1513 = vst [vmem:[%s2729_s17 + $0x50] sm:$0xff] %v1771_v52 }
 0x39a   : > { %v2778_v48 = vpop.eup %1984  ;;  %2004 = vrcp.f32 %v1074_v22 }
 0x39b   : > { %v1987_v12 = vpop.eup %1986  ;;  %2006 = vpow2.f32 %v991_v6  ;;  %1115 = vadd.xlane.f32.xlu1 %v1114_v40  ;;  %v1059_v32 = vpop.xlane.xlu0 %1058  ;;  %v1105_v28 = vadd.f32 %v2778_v48, %v2773_v19 }
 0x39c   : > { %v1989_v33 = vpop.eup %1988  ;;  %2008 = vpow2.f32 %v993_v42  ;;  %v1201_v21 = vmul.f32 %v1987_v12, %v2567_v10  ;;  %v1202_v41 = vmul.f32 %v1987_v12, %v2571_v4 }
 0x39d   : > { %2010 = vrcp.f32 %v1059_v32  ;;  %v1068_v50 = vpop.xlane.xlu1 %1067  ;;  %1106 = vadd.xlane.f32.xlu0 %v1105_v28  ;;  %v1195_v46 = vmul.f32 %v1989_v33, %v2574_v25  ;;  %v1196_v47 = vmul.f32 %v1989_v33, %v2579_v38 }
 0x39e   : > { %v1254_v60 = vpack.c.bf16 %v1202_v41, %v1200_v36  ;;  %v1772_v58 = vpack.c.bf16 %v1202_v41, %v1201_v21  ;;  %v1253_v57 = vpack.c.bf16 %v1201_v21, %v1199_v53  ;;  %2012 = vrcp.f32 %v1068_v50 }
 0x39f   : > { %v2786_v16 = vpop.eup %1990  ;;  %v1053_v39 = vpop.xlane.xlu0 %1052  ;;  %v1769_v0 = vpack.c.bf16 %v1196_v47, %v1195_v46 }
 0x3a0   : > { %v2788_v10 = vpop.eup %1992  ;;  %1291 = vmatprep.subr.bf16.mxu1 %v1254_v60  ;;  %1514 = vst [vmem:[%s2729_s17 + $0x58] sm:$0xff] %v1772_v58  ;;  %2014 = vrcp.f32 %v1053_v39  ;;  %v3033_v60 = vld [vmem:[#allocation15_spill] sm:$0xff] }
 0x3a1   : > { %v2791_v4 = vpop.eup %1994  ;;  %1292 = vmatpush1.bf16.xpose.msra.mxu1 %v1253_v57  ;;  %v1062_v25 = vpop.xlane.xlu1 %1061  ;;  %v1108_v38 = vadd.f32 %v2788_v10, %v2786_v16  ;;  %1511 = vst [vmem:[%s2729_s17 + $0x40] sm:$0xff] %v1769_v0 }
 0x3a2   : > { %v2796_v36 = vpop.eup %1996  ;;  %2016 = vrcp.f32 %v1062_v25 }
 0x3a3   : > { %v1999_v53 = vpop.eup %1998  ;;  %1109 = vadd.xlane.f32.xlu1 %v1108_v38  ;;  %v1099_v56 = vadd.f32 %v2796_v36, %v2791_v4 }
 0x3a4   : > { %v2001_v37 = vpop.eup %2000  ;;  %v1197_v30 = vmul.f32 %v1999_v53, %v2590_v23  ;;  %v1198_v11 = vmul.f32 %v1999_v53, %v2595_v7  ;;  %v3034_v53 = vld [vmem:[#allocation14_spill] sm:$0xff] }
 0x3a5   : > { %v2003_v45 = vpop.eup %2002  ;;  %v1056_v43 = vpop.xlane.xlu1 %1055  ;;  %1100 = vadd.xlane.f32.xlu0 %v1099_v56  ;;  %v1191_v52 = vmul.f32 %v2001_v37, %v2597_v59  ;;  %v1192_v6 = vmul.f32 %v2001_v37, %v2601_v17  ;;  %v3035_v37 = vld [vmem:[#allocation13_spill] sm:$0xff] }
 0x3a6   : > { %v1252_v42 = vpack.c.bf16 %v1198_v11, %v1196_v47  ;;  %v1770_v22 = vpack.c.bf16 %v1198_v11, %v1197_v30  ;;  %v1251_v40 = vpack.c.bf16 %v1197_v30, %v1195_v46  ;;  %2018 = vrcp.f32 %v1056_v43  ;;  %v3036_v30 = vld [vmem:[#allocation12_spill] sm:$0xff] }
 0x3a7   : > { %v2005_v12 = vpop.eup %2004  ;;  %v1767_v32 = vpack.c.bf16 %v1192_v6, %v1191_v52  ;;  %v1187_v28 = vmul.f32 %v2003_v45, %v2611_v2  ;;  %v1188_v23 = vmul.f32 %v2003_v45, %v2615_v26  ;;  %v3037_v45 = vld [vmem:[#allocation11_spill] sm:$0xff] }
 0x3a8   : > { %v2806_v7 = vpop.eup %2006  ;;  %1293 = vmatprep.subr.bf16.mxu1 %v1252_v42  ;;  %1512 = vst [vmem:[%s2729_s17 + $0x48] sm:$0xff] %v1770_v22  ;;  %v1193_v59 = vmul.f32 %v2005_v12, %v2605_v34  ;;  %v1194_v17 = vmul.f32 %v2005_v12, %v2609_v1  ;;  %v3038_v22 = vld [vmem:[#allocation26_spill] sm:$0xff]  ;;  %v3039_v12 = vld [vmem:[#allocation27_spill] sm:$0xff] }
 0x3a9   : > { %v2811_v33 = vpop.eup %2008  ;;  %1294 = vmatpush1.bf16.xpose.msra.mxu1 %v1251_v40  ;;  %1509 = vst [vmem:[%s2729_s17 + $0x30] sm:$0xff] %v1767_v32  ;;  %v1765_v21 = vpack.c.bf16 %v1188_v23, %v1187_v28 }
 0x3aa   : > { %v2011_v41 = vpop.eup %2010  ;;  %v1102_v2 = vadd.f32 %v2811_v33, %v2806_v7  ;;  %v1250_v50 = vpack.c.bf16 %v1194_v17, %v1192_v6  ;;  %v1768_v26 = vpack.c.bf16 %v1194_v17, %v1193_v59  ;;  %v1249_v39 = vpack.c.bf16 %v1193_v59, %v1191_v52 }
 0x3ab   : > { %v2013_v46 = vpop.eup %2012  ;;  %1507 = vst [vmem:[%s2729_s17 + $0x20] sm:$0xff] %v1765_v21  ;;  %v1183_v47 = vmul.f32 %v2011_v41, %v2623_v14  ;;  %v1184_v34 = vmul.f32 %v2011_v41, %v2627_v35 }
 0x3ac   : > { %1103 = vadd.xlane.f32.xlu1 %v1102_v2  ;;  %1295 = vmatprep.subr.bf16.mxu1 %v1250_v50  ;;  %1510 = vst [vmem:[%s2729_s17 + $0x38] sm:$0xff] %v1768_v26  ;;  %v1189_v1 = vmul.f32 %v2013_v46, %v2617_v13  ;;  %v1190_v58 = vmul.f32 %v2013_v46, %v3033_v60 }
 0x3ad   : > { %v2015_v57 = vpop.eup %2014  ;;  %v1763_v0 = vpack.c.bf16 %v1184_v34, %v1183_v47 }
 0x3ae   : > { %v1248_v25 = vpack.c.bf16 %v1190_v58, %v1188_v23  ;;  %v1766_v38 = vpack.c.bf16 %v1190_v58, %v1189_v1  ;;  %v1179_v56 = vmul.f32 %v2015_v57, %v3034_v53  ;;  %v1180_v35 = vmul.f32 %v2015_v57, %v3035_v37 }
 0x3af   : > { %v2017_v14 = vpop.eup %2016  ;;  %1505 = vst [vmem:[%s2729_s17 + $0x10] sm:$0xff] %v1763_v0  ;;  %v1247_v59 = vpack.c.bf16 %v1189_v1, %v1187_v28 }
 0x3b0   : > { %1508 = vst [vmem:[%s2729_s17 + $0x28] sm:$0xff] %v1766_v38  ;;  %v1185_v11 = vmul.f32 %v2017_v14, %v3036_v30  ;;  %v1186_v13 = vmul.f32 %v2017_v14, %v3037_v45  ;;  %v1761_v43 = vpack.c.bf16 %v1180_v35, %v1179_v56 }
 0x3b1   : > { %1296 = vmatpush1.bf16.xpose.msra.mxu1 %v1249_v39 }
 0x3b2   : > { %1297 = vmatprep.subr.bf16.mxu1 %v1248_v25  ;;  %v1764_v52 = vpack.c.bf16 %v1186_v13, %v1185_v11  ;;  %1503 = vst [vmem:[%s2729_s17] sm:$0xff] %v1761_v43  ;;  %v1246_v21 = vpack.c.bf16 %v1186_v13, %v1184_v34  ;;  %v1245_v26 = vpack.c.bf16 %v1185_v11, %v1183_v47 }
 0x3b3   : > { %v2019_v6 = vpop.eup %2018  ;;  %v1143_v42 = vpop.xlane.xlu0 %1142 }
 0x3b4   : > { %2020 = vrcp.f32 %v1143_v42  ;;  %1506 = vst [vmem:[%s2729_s17 + $0x18] sm:$0xff] %v1764_v52  ;;  %v1181_v40 = vmul.f32 %v2019_v6, %v3038_v22  ;;  %v1182_v32 = vmul.f32 %v2019_v6, %v3039_v12  ;;  %v3040_v6 = vld [vmem:[#allocation23_spill] sm:$0xff] }
 0x3b5   : > { %v3041_v22 = vld [vmem:[#allocation19_spill] sm:$0xff] }
 0x3b6   : > { %v1762_v23 = vpack.c.bf16 %v1182_v32, %v1181_v40  ;;  %v1244_v60 = vpack.c.bf16 %v1182_v32, %v1180_v35  ;;  %v1243_v53 = vpack.c.bf16 %v1181_v40, %v1179_v56 }
 0x3b7   : > { %v1137_v17 = vpop.xlane.xlu0 %1136 }
 0x3b8   : > { %2022 = vrcp.f32 %v1137_v17  ;;  %1504 = vst [vmem:[%s2729_s17 + $0x8] sm:$0xff] %v1762_v23 }
 0x3b9   : > { %1298 = vmatpush1.bf16.xpose.msra.mxu1 %v1247_v59  ;;  %v1146_v41 = vpop.xlane.xlu1 %1145  ;;  %v3043_v59 = vld [vmem:[#allocation24_spill] sm:$0xff] }
 0x3ba   : > { %1299 = vmatprep.subr.bf16.mxu1 %v1246_v21  ;;  %2024 = vrcp.f32 %v1146_v41  ;;  %v3044_v21 = vld [vmem:[#allocation25_spill] sm:$0xff] }
 0x3bb   : > { %v1131_v2 = vpop.xlane.xlu0 %1130 }
 0x3bc   : > { %2026 = vrcp.f32 %v1131_v2 }
 0x3bd   : > { %v1140_v50 = vpop.xlane.xlu1 %1139 }
 0x3be   : > { %2028 = vrcp.f32 %v1140_v50 }
 0x3bf   : > { %v1125_v46 = vpop.xlane.xlu0 %1124 }
 0x3c0   : > { %2030 = vrcp.f32 %v1125_v46 }
 0x3c1   : > { %v2021_v58 = vpop.eup %2020  ;;  %1300 = vmatpush1.bf16.xpose.msra.mxu1 %v1245_v26  ;;  %v1134_v28 = vpop.xlane.xlu1 %1133 }
 0x3c2   : > { %1301 = vmatprep.subr.bf16.mxu1 %v1244_v60  ;;  %2032 = vrcp.f32 %v1134_v28  ;;  %v1239_v34 = vmul.f32 %v2021_v58, %v2667_v55  ;;  %v1240_v1 = vmul.f32 %v2021_v58, %v2669_v61 }
 0x3c4   : > { %v1791_v57 = vpack.c.bf16 %v1240_v1, %v1239_v34 }
 0x3c5   : > { %v2023_v39 = vpop.eup %2022  ;;  %v1128_v0 = vpop.xlane.xlu1 %1127 }
 0x3c6   : > { %2034 = vrcp.f32 %v1128_v0  ;;  %1533 = vst [vmem:[%s2729_s17 + $0xf0] sm:$0xff] %v1791_v57  ;;  %v1235_v47 = vmul.f32 %v2023_v39, %v2673_v51  ;;  %v1236_v25 = vmul.f32 %v2023_v39, %v2675_v54 }
 0x3c7   : > { %v2025_v38 = vpop.eup %2024 }
 0x3c8   : > { %v1241_v14 = vmul.f32 %v2025_v38, %v2677_v8  ;;  %v1242_v37 = vmul.f32 %v2025_v38, %v2681_v3  ;;  %v1789_v55 = vpack.c.bf16 %v1236_v25, %v1235_v47 }
 0x3c9   : > { %v2027_v35 = vpop.eup %2026  ;;  %1302 = vmatpush1.bf16.xpose.msra.mxu1 %v1243_v53 }
 0x3ca   : > { %v1274_v61 = vpack.c.bf16 %v1242_v37, %v1240_v1  ;;  %v1792_v30 = vpack.c.bf16 %v1242_v37, %v1241_v14  ;;  %1531 = vst [vmem:[%s2729_s17 + $0xe0] sm:$0xff] %v1789_v55  ;;  %v1231_v11 = vmul.f32 %v2027_v35, %v2683_v63  ;;  %v1232_v45 = vmul.f32 %v2027_v35, %v2687_v24 }
 0x3cb   : > { %v2029_v51 = vpop.eup %2028  ;;  %v1273_v56 = vpack.c.bf16 %v1241_v14, %v1239_v34 }
 0x3cc   : > { %1303 = vmatprep.subr.bf16.mxu1 %v1274_v61  ;;  %1534 = vst [vmem:[%s2729_s17 + $0xf8] sm:$0xff] %v1792_v30  ;;  %v1237_v54 = vmul.f32 %v2029_v51, %v2689_v15  ;;  %v1238_v8 = vmul.f32 %v2029_v51, %v2693_v31  ;;  %v1787_v13 = vpack.c.bf16 %v1232_v45, %v1231_v11  ;;  %v3042_v15 = vld [vmem:[#allocation20_spill] sm:$0xff] }
 0x3cd   : > { %v2031_v3 = vpop.eup %2030 }
 0x3ce   : > { %v1272_v43 = vpack.c.bf16 %v1238_v8, %v1236_v25  ;;  %v1790_v52 = vpack.c.bf16 %v1238_v8, %v1237_v54  ;;  %v1227_v42 = vmul.f32 %v2031_v3, %v3040_v6  ;;  %1529 = vst [vmem:[%s2729_s17 + $0xd0] sm:$0xff] %v1787_v13  ;;  %v1228_v40 = vmul.f32 %v2031_v3, %v3041_v22 }
 0x3cf   : > { %v2033_v63 = vpop.eup %2032  ;;  %v1271_v50 = vpack.c.bf16 %v1237_v54, %v1235_v47 }
 0x3d0   : > { %1532 = vst [vmem:[%s2729_s17 + $0xe8] sm:$0xff] %v1790_v52  ;;  %v1233_v24 = vmul.f32 %v2033_v63, %v2701_v27  ;;  %v1234_v12 = vmul.f32 %v2033_v63, %v3042_v15  ;;  %v1785_v31 = vpack.c.bf16 %v1228_v40, %v1227_v42 }
 0x3d1   : > { %1304 = vmatpush2.bf16.xpose.msra.mxu1 %v1273_v56 }
 0x3d2   : > { %1305 = vmatprep.subr.bf16.mxu1 %v1272_v43  ;;  %v1788_v32 = vpack.c.bf16 %v1234_v12, %v1233_v24  ;;  %1527 = vst [vmem:[%s2729_s17 + $0xc0] sm:$0xff] %v1785_v31  ;;  %v1270_v26 = vpack.c.bf16 %v1234_v12, %v1232_v45  ;;  %v1269_v27 = vpack.c.bf16 %v1233_v24, %v1231_v11 }
 0x3d3   : > { %v2035_v23 = vpop.eup %2034 }
 0x3d4   : > { %1530 = vst [vmem:[%s2729_s17 + $0xd8] sm:$0xff] %v1788_v32  ;;  %v1229_v17 = vmul.f32 %v2035_v23, %v3043_v59  ;;  %v1230_v41 = vmul.f32 %v2035_v23, %v3044_v21 }
 0x3d6   : > { %v1786_v2 = vpack.c.bf16 %v1230_v41, %v1229_v17  ;;  %v1268_v46 = vpack.c.bf16 %v1230_v41, %v1228_v40  ;;  %v1267_v60 = vpack.c.bf16 %v1229_v17, %v1227_v42 }
 0x3d8   : > { %1528 = vst [vmem:[%s2729_s17 + $0xc8] sm:$0xff] %v1786_v2 }
 0x3d9   : > { %1306 = vmatpush2.bf16.xpose.msra.mxu1 %v1271_v50 }
 0x3da   : > { %1307 = vmatprep.subr.bf16.mxu1 %v1270_v26 }
 0x3e1   : > { %1308 = vmatpush2.bf16.xpose.msra.mxu1 %v1269_v27 }
 0x3e2   : > { %1309 = vmatprep.subr.bf16.mxu1 %v1268_v46 }
 0x3e9   : > { %1310 = vmatpush2.bf16.xpose.msra.mxu1 %v1267_v60 }
 0x417   : > { %v1119_v58 = vpop.xlane.xlu0 %1118 }
 0x418   : > { %2036 = vrcp.f32 %v1119_v58 }
 0x41c   : > { %v1122_v28 = vpop.xlane.xlu1 %1121 }
 0x41d   : > { %2038 = vrcp.f32 %v1122_v28 }
 0x41e   : > { %v1113_v34 = vpop.xlane.xlu0 %1112 }
 0x41f   : > { %2040 = vrcp.f32 %v1113_v34 }
 0x424   : > { %v1116_v1 = vpop.xlane.xlu1 %1115 }
 0x425   : > { %v2037_v57 = vpop.eup %2036  ;;  %2042 = vrcp.f32 %v1116_v1 }
 0x426   : > { %v1107_v39 = vpop.xlane.xlu0 %1106  ;;  %v1223_v0 = vmul.f32 %v2037_v57, %v2734_v49  ;;  %v1224_v47 = vmul.f32 %v2037_v57, %v2738_v5 }
 0x427   : > { %2044 = vrcp.f32 %v1107_v39 }
 0x428   : > { %v1783_v25 = vpack.c.bf16 %v1224_v47, %v1223_v0 }
 0x42a   : > { %v2039_v38 = vpop.eup %2038  ;;  %1525 = vst [vmem:[%s2729_s17 + $0xb0] sm:$0xff] %v1783_v25 }
 0x42b   : > { %v1225_v53 = vmul.f32 %v2039_v38, %v2747_v44  ;;  %v1226_v14 = vmul.f32 %v2039_v38, %v2749_v29 }
 0x42c   : > { %v2041_v37 = vpop.eup %2040  ;;  %v1110_v55 = vpop.xlane.xlu1 %1109 }
 0x42d   : > { %2046 = vrcp.f32 %v1110_v55  ;;  %v1266_v35 = vpack.c.bf16 %v1226_v14, %v1224_v47  ;;  %v1784_v61 = vpack.c.bf16 %v1226_v14, %v1225_v53  ;;  %v1265_v30 = vpack.c.bf16 %v1225_v53, %v1223_v0 }
 0x42e   : > { %v1101_v11 = vpop.xlane.xlu0 %1100  ;;  %v1219_v49 = vmul.f32 %v2041_v37, %v2754_v20  ;;  %v1220_v5 = vmul.f32 %v2041_v37, %v2758_v62 }
 0x42f   : > { %1311 = vmatprep.subr.bf16.mxu1 %v1266_v35  ;;  %1526 = vst [vmem:[%s2729_s17 + $0xb8] sm:$0xff] %v1784_v61  ;;  %2048 = vrcp.f32 %v1101_v11 }
 0x430   : > { %1312 = vmatpush2.bf16.xpose.msra.mxu1 %v1265_v30  ;;  %v1781_v44 = vpack.c.bf16 %v1220_v5, %v1219_v49 }
 0x432   : > { %v2043_v51 = vpop.eup %2042  ;;  %1523 = vst [vmem:[%s2729_s17 + $0xa0] sm:$0xff] %v1781_v44 }
 0x433   : > { %v1221_v29 = vmul.f32 %v2043_v51, %v2766_v9  ;;  %v1222_v45 = vmul.f32 %v2043_v51, %v2770_v18 }
 0x434   : > { %v2045_v54 = vpop.eup %2044 }
 0x435   : > { %v1104_v8 = vpop.xlane.xlu1 %1103  ;;  %v1264_v3 = vpack.c.bf16 %v1222_v45, %v1220_v5  ;;  %v1782_v56 = vpack.c.bf16 %v1222_v45, %v1221_v29  ;;  %v1263_v20 = vpack.c.bf16 %v1221_v29, %v1219_v49  ;;  %v1215_v62 = vmul.f32 %v2045_v54, %v2773_v19 }
 0x436   : > { %2050 = vrcp.f32 %v1104_v8  ;;  %v1216_v13 = vmul.f32 %v2045_v54, %v2778_v48 }
 0x437   : > { %1313 = vmatprep.subr.bf16.mxu1 %v1264_v3  ;;  %1524 = vst [vmem:[%s2729_s17 + $0xa8] sm:$0xff] %v1782_v56 }
 0x438   : > { %1314 = vmatpush2.bf16.xpose.msra.mxu1 %v1263_v20  ;;  %v1779_v43 = vpack.c.bf16 %v1216_v13, %v1215_v62 }
 0x43a   : > { %v2047_v52 = vpop.eup %2046  ;;  %1521 = vst [vmem:[%s2729_s17 + $0x90] sm:$0xff] %v1779_v43 }
 0x43b   : > { %v1217_v9 = vmul.f32 %v2047_v52, %v2786_v16  ;;  %v1218_v18 = vmul.f32 %v2047_v52, %v2788_v10 }
 0x43c   : > { %v2049_v6 = vpop.eup %2048 }
 0x43d   : > { %v1262_v42 = vpack.c.bf16 %v1218_v18, %v1216_v13  ;;  %v1780_v63 = vpack.c.bf16 %v1218_v18, %v1217_v9  ;;  %v1261_v19 = vpack.c.bf16 %v1217_v9, %v1215_v62  ;;  %v1211_v22 = vmul.f32 %v2049_v6, %v2791_v4  ;;  %v2052_v4 = vld.sshfl [vmem:[#allocation3] sm:$0x33 pattern:$0x76325410] }
 0x43e   : > { %v1212_v48 = vmul.f32 %v2049_v6, %v2796_v36 }
 0x43f   : > { %1315 = vmatprep.subr.bf16.mxu1 %v1262_v42  ;;  %1522 = vst [vmem:[%s2729_s17 + $0x98] sm:$0xff] %v1780_v63 }
 0x440   : > { %1316 = vmatpush2.bf16.xpose.msra.mxu1 %v1261_v19  ;;  %v1777_v40 = vpack.c.bf16 %v1212_v48, %v1211_v22 }
 0x442   : > { %1519 = vst [vmem:[%s2729_s17 + $0x80] sm:$0xff] %v1777_v40 }
 0x443   : > { %v2051_v16 = vpop.eup %2050 }
 0x444   : > { %v1213_v10 = vmul.f32 %v2051_v16, %v2806_v7  ;;  %v1214_v24 = vmul.f32 %v2051_v16, %v2811_v33 }
 0x446   : > { %v1260_v15 = vpack.c.bf16 %v1214_v24, %v1212_v48  ;;  %v1778_v12 = vpack.c.bf16 %v1214_v24, %v1213_v10  ;;  %v1259_v31 = vpack.c.bf16 %v1213_v10, %v1211_v22 }
 0x448   : > { %1317 = vmatprep.subr.bf16.mxu1 %v1260_v15  ;;  %1520 = vst [vmem:[%s2729_s17 + $0x88] sm:$0xff] %v1778_v12 }
 0x449   : > { %1318 = vmatpush2.bf16.xpose.msra.mxu1 %v1259_v31 }
 0x450   : > { %1320 = vmatmul.mubr.bf16.vlgmr.msra.gmra.mxu1 %v2052_v4 }
 0x451   : > { %2068 = shalt.err (!%p2065_p5)
}
 0x452   : > { %s2069_s16 = scalar_lea.hbm %s2886_s22, 4096  ;;  %s2073_s20 = scalar_lea.hbm %s2961_s7, 8192 }
 0x453   : > { %p2070_p6 = scmp.ne.s32.totalorder %s2886_s22, %s2069_s16  ;;  %p2074_p10 = scmp.lt.s32.totalorder %s2886_s22, %s2961_s7 }
 0x454   : > { %p2075_p11 = scmp.lt.s32.totalorder %s2073_s20, %s2069_s16 }
 0x455   : > { %p2071_p7 = pnand %p2070_p6, %p2252_p4 }
 0x456   : > { %p2076_p12 = por %p2075_p11, %p2074_p10 }
 0x457   : > { %p2072_p9 = pneg %p2071_p7 }
 0x459   : > { %p2077_p13 = pnand %p2076_p12, %p2072_p9 }
 0x45b   : > { %2080 = shalt.err (!%p2077_p13)
}
 0x45c   : > { %s2166_s25 = smov 128   ;;  %s2167_s9 = smov 8   ;;  %v2053_v36 = vld [vmem:[%s2281_s24] sm:$0xf] }
 0x45d   : > { %1796 = dma.vmem_to_hbm [thread:$0]  (%p2252_p4), %s2888_s19, 4096, %s2886_s22, %s1541_s23, %s2166_s25, %s2166_s25, %s2167_s9   ;;  %v1332_v7 = vunpack.c.l.bf16 %v2053_v36 }
 0x45e   : > { %s1328_s11 = sld [smem:[#allocation4]]  ;;  %s1690_s16 = sshll.u32 %s2720_s13, 3 }
 0x45f   : > { %v1334_v59 = vcombine.high %v1332_v7, %v1332_v7  ;;  %s1793_s17 = sshll.u32 %s2153_s29, 7  ;;  %s292_s18 = scalar_lea.vmem [#allocation5], %s1690_s16 }
 0x460   : > { %s1557_s20 = sshll.u32 %s292_s18, 4  ;;  %s1555_s22 = scalar_lea.hbm %s2960_s6, %s1793_s17  ;;  %s1558_s20 = int_to_ptr.vmem [resolvable:$true] %s1557_s20 }
 0x461   : > { %s1536_s23 = scalar_lea.sflag [#allocation6], %s2720_s13  ;;  %s2081_s21 = scalar_lea.vmem %s1558_s20, 128 }
 0x462   : > { %p2082_p0 = scmp.ne.s32.totalorder %s1558_s20, %s2081_s21  ;;  %s2168_s0 = smov [#allocation5]  }
 0x463   : > { %s2085_s29 = sshll.u32 %s2168_s0, 4  ;;  %s2086_s29 = int_to_ptr.vmem [resolvable:$false] %s2085_s29 }
 0x464   : > { %v1329_v33 = vstv %s1328_s11  ;;  %p2083_p1 = pnand %p2082_p0, %p2252_p4  ;;  %s2087_s25 = scalar_lea.vmem %s2086_s29, 256 }
 0x465   : > { %p2088_p3 = scmp.lt.s32.totalorder %s1558_s20, %s2086_s29  ;;  %p2089_p5 = scmp.lt.s32.totalorder %s2087_s25, %s2081_s21 }
 0x466   : > { %p2084_p2 = pneg %p2083_p1 }
 0x467   : > { %p2090_p6 = por %p2089_p5, %p2088_p3 }
 0x469   : > { %p2091_p7 = pnand %p2090_p6, %p2084_p2 }
 0x510   : > { %v1321_v32 = vpop.f32.mrf.mxu1 }
 0x511   : > { %v1330_v23 = vmul.f32 %v1329_v33, %v1321_v32 }
 0x512   : > { %v1323_v17 = vpop.f32.mrf.mxu1 }
 0x513   : > { %v1331_v21 = vmul.f32 %v1329_v33, %v1323_v17  ;;  %v1336_v2 = vadd.f32 %v1332_v7, %v1330_v23 }
 0x514   : > { %v1325_v41 = vpop.f32.mrf.mxu1 }
 0x515   : > { %v1337_v50 = vadd.f32 %v1334_v59, %v1331_v21 }
 0x516   : > { %v1326_v26 = vpop.f32.mrf.mxu1 }
 0x517   : > { %v1340_v27 = vcombine.low %v1336_v2, %v1337_v50 }
 0x519   : > { %1342 = vst [vmem:[%s292_s18] sm:$0xff] %v1340_v27 }
 0x51a   : > { %2094 = shalt.err (!%p2091_p7)
}
 0x51b   : > { %s2095_s9 = scalar_lea.hbm %s1555_s22, 128  ;;  %s2099_s16 = scalar_lea.hbm %s2960_s6, 256 }
 0x51c   : > { %p2096_p9 = scmp.ne.s32.totalorder %s1555_s22, %s2095_s9  ;;  %p2100_p12 = scmp.lt.s32.totalorder %s1555_s22, %s2960_s6 }
 0x51d   : > { %p2101_p13 = scmp.lt.s32.totalorder %s2099_s16, %s2095_s9 }
 0x51e   : > { %p2097_p10 = pnand %p2096_p9, %p2252_p4 }
 0x51f   : > { %p2102_p0 = por %p2101_p13, %p2100_p12 }
 0x520   : > { %p2098_p11 = pneg %p2097_p10 }
 0x522   : > { %p2103_p1 = pnand %p2102_p0, %p2098_p11 }
 0x524   : > { %2106 = shalt.err (!%p2103_p1)
}
 0x525   : > { %1795 = dma.vmem_to_hbm [thread:$0]  (%p2252_p4), %s1558_s20, 128, %s1555_s22, %s1536_s23  }
 0x526 PF: > { %p1806_p2 = scmp.ge.s32.totalorder %s2161_s8, 2  ;;  %s1588_s19 = sand.u32 1, %s2141_s26  }
 0x527   : > { %s1589_s24 = scalar_lea.sflag [#allocation6], %s1588_s19 }
 0x528   : > { %p1800_p3 = pnand %p1806_p2, %p2259_p8 }
 0x52a   : > { %p1801_p5 = pneg %p1800_p3 }
 0x52c   : > { %2132 = dma.done.wait (%p1801_p5), %s1589_s24, 128  }
 0x52d   : > { %2134 = vsyncadd (%p1801_p5), %s1589_s24, 4294967168  ;;  %s1598_s21 = scalar_lea.sflag [#allocation8], %s1588_s19 }
 0x52e   : > { %2136 = dma.done.wait (%p1801_p5), %s1598_s21, 4096  }
 0x52f   : > { %2138 = vsyncadd (%p1801_p5), %s1598_s21, 4294963200  ;;  %s25_s8 = sadd.s32 1, %s2161_s8   ;;  %s3045_s26 = smov %s2145_s27 }
 0x530   : > { %p22_p6 = scmp.ge.s32.totalorder %s25_s8, 4   ;;  %s3046_s27 = smov %s2149_s28 }
 0x531   : > { %s3047_s28 = smov %s2265_s15  ;;  %s3048_s29 = smov %s2157_s30 }
 0x532   : > { %s3049_s30 = smov %s3051_s10  ;;  %24 = sbr.rel (!%p22_p6) target bundleno = 8 (0x8), region = 101 }
 0x537   :  { %1603 = vsyncpa [#allocation6], 1 }
 0x538   :  { %1605 = vsyncpa [#allocation6 + $0x1], 1 }
 0x539   :  { %1606 = vsyncpa [#allocation8], 1 }
 0x53a   :  { %1608 = vsyncpa [#allocation8 + $0x1], 1 }

</bundles_post_ra>
